<compile_context>
chip_gen: v5e
topology: v5e:2x2
jax: 0.10.0
libtpu: 0.0.40
codegen_flags: <defaults>
</compile_context>

<pallas_src>
import jax
import jax.numpy as jnp
from jax.experimental import pallas as pl
from jax.experimental.pallas import tpu as pltpu

_HIGHEST = jax.lax.Precision.HIGHEST
_STEP_PRECISION = _HIGHEST   # candidate: jax.lax.Precision.HIGH (verify vs ref)


def _round_up(n, m):
    return ((n + m - 1) // m) * m


def rnn_kernel(x_ref, w_ih_ref, w_hh_ref, b_ref, w_fc_ref, b_fc_ref, out_ref):
    """Whole-sequence RNN recurrence + fused FC head, single invocation.

    x_ref    : (T*Bp, I)   time-major input, batch padded to 8 sublanes
    w_ih_ref : (I, Hp)     input->hidden weight (transposed, H zero-padded)
    w_hh_ref : (Hp, Hp)    hidden->hidden weight (transposed, zero-padded)
    b_ref    : (1, Hp)     combined bias b_ih + b_hh (zero-padded)
    w_fc_ref : (Hp, 128)   FC weight, only column 0 real (lane-dense head)
    b_fc_ref : (1, 128)    FC bias, only column 0 real
    out_ref  : (Bp, 128)   lane-dense output; real result is [:B, :1]
    """
    TB, _ = x_ref.shape
    Hp = w_hh_ref.shape[0]
    Bp = out_ref.shape[0]
    T = TB // Bp

    # Phase 1: input projection hoisted off the serial critical path.
    # One (T*Bp, I) @ (I, Hp) MXU matmul, bias folded in; result stays in
    # registers (T=8, Bp=8, Hp=128 -> 8 vregs), no VMEM scratch round trip.
    pre = jnp.dot(x_ref[...], w_ih_ref[...],
                  preferred_element_type=jnp.float32,
                  precision=_HIGHEST) + b_ref[...]          # (T*Bp, Hp)

    # Phase 2: serial recurrence.  Static Python loop -> concrete, vreg-aligned
    # slices of the register-resident `pre`; W_hh loaded once.
    w_hh = w_hh_ref[...]
    h = jnp.zeros((Bp, Hp), jnp.float32)
    for t in range(T):
        hh = jnp.dot(h, w_hh,
                     preferred_element_type=jnp.float32,
                     precision=_STEP_PRECISION)
        h = jnp.tanh(pre[t * Bp:(t + 1) * Bp, :] + hh)

    # Phase 3: fused FC head.  128-lane padded W_fc keeps the store unmasked.
    out_ref[...] = jnp.dot(h, w_fc_ref[...],
                           preferred_element_type=jnp.float32,
                           precision=_HIGHEST) + b_fc_ref[...]


def prepare_params(params):
    """One-time (off the per-call path) padding/transposition of the weights."""
    H, I = params["w_ih"].shape
    Hp = _round_up(max(H, 128), 128)     # lane width; do NOT round to 256
    w_ih_p = jnp.zeros((I, Hp), jnp.float32).at[:, :H].set(params["w_ih"].T)
    w_hh_p = jnp.zeros((Hp, Hp), jnp.float32).at[:H, :H].set(params["w_hh"].T)
    b_p = jnp.zeros((1, Hp), jnp.float32).at[0, :H].set(
        params["b_ih"] + params["b_hh"])
    w_fc_p = jnp.zeros((Hp, 128), jnp.float32).at[:H, 0].set(params["w_fc"][0])
    b_fc_p = jnp.zeros((1, 128), jnp.float32).at[0, 0].set(params["b_fc"][0])
    return {"w_ih": w_ih_p, "w_hh": w_hh_p, "b": b_p,
            "w_fc": w_fc_p, "b_fc": b_fc_p}


@jax.jit
def recurrent_net_forward(x, padded):
    """x: (B, T, input_size) float32, batch-first (PyTorch convention).

    `padded` is the output of prepare_params (already padded / transposed).
    """
    B, T, I = x.shape
    Hp = padded["w_hh"].shape[0]
    Bp = _round_up(max(B, 8), 8)          # sublane width

    # Time-major, batch padded to 8 sublanes (input lanes left unpadded).
    # Zero padding keeps results exact: padded rows evolve independently and
    # are sliced off; padded hidden columns stay exactly 0 through tanh.
    x_tm = jnp.transpose(x, (1, 0, 2)).astype(jnp.float32)          # (T, B, I)
    x_pad = jnp.zeros((T, Bp, I), jnp.float32).at[:, :B, :].set(x_tm)
    x2d = x_pad.reshape(T * Bp, I)

    out_pad = pl.pallas_call(
        rnn_kernel,
        out_shape=jax.ShapeDtypeStruct((Bp, 128), jnp.float32),
        in_specs=[
            pl.BlockSpec(memory_space=pltpu.MemorySpace.VMEM),   # x (whole seq)
            pl.BlockSpec(memory_space=pltpu.MemorySpace.VMEM),   # W_ih^T
            pl.BlockSpec(memory_space=pltpu.MemorySpace.VMEM),   # W_hh^T
            pl.BlockSpec(memory_space=pltpu.MemorySpace.VMEM),   # b_ih + b_hh
            pl.BlockSpec(memory_space=pltpu.MemorySpace.VMEM),   # W_fc (padded)
            pl.BlockSpec(memory_space=pltpu.MemorySpace.VMEM),   # b_fc (padded)
        ],
        out_specs=pl.BlockSpec(memory_space=pltpu.MemorySpace.VMEM),
    )(x2d, padded["w_ih"], padded["w_hh"], padded["b"],
      padded["w_fc"], padded["b_fc"])

    return out_pad[:B, :1]


def init_params(key, input_size, hidden_size=32):
    """Deterministic init matching PyTorch parameter shapes.

    PyTorch shapes: weight_ih_l0 (H, I), weight_hh_l0 (H, H), biases (H,),
    fc.weight (1, H), fc.bias (1,).
    """
    ks = jax.random.split(key, 6)
    bound = 1.0 / jnp.sqrt(hidden_size)
    w_ih = jax.random.uniform(ks[0], (hidden_size, input_size),
                              minval=-bound, maxval=bound, dtype=jnp.float32)
    w_hh = jax.random.uniform(ks[1], (hidden_size, hidden_size),
                              minval=-bound, maxval=bound, dtype=jnp.float32)
    b_ih = jax.random.uniform(ks[2], (hidden_size,),
                              minval=-bound, maxval=bound, dtype=jnp.float32)
    b_hh = jax.random.uniform(ks[3], (hidden_size,),
                              minval=-bound, maxval=bound, dtype=jnp.float32)
    w_fc = jax.random.uniform(ks[4], (1, hidden_size),
                              minval=-bound, maxval=bound, dtype=jnp.float32)
    b_fc = jax.random.uniform(ks[5], (1,),
                              minval=-bound, maxval=bound, dtype=jnp.float32)
    return {"w_ih": w_ih, "w_hh": w_hh, "b_ih": b_ih, "b_hh": b_hh,
            "w_fc": w_fc, "b_fc": b_fc}


def reference_forward(x, params):
    """Pure-JAX reference mirroring torch.nn.RNN(batch_first=True) + Linear."""
    B, T, I = x.shape
    H = params["w_hh"].shape[0]
    h = jnp.zeros((B, H), jnp.float32)
    b = params["b_ih"] + params["b_hh"]
    for t in range(T):
        h = jnp.tanh(
            jnp.dot(x[:, t, :], params["w_ih"].T, precision=_HIGHEST)
            + jnp.dot(h, params["w_hh"].T, precision=_HIGHEST) + b)
    return jnp.dot(h, params["w_fc"].T, precision=_HIGHEST) + params["b_fc"][None, :]


if __name__ == "__main__":
    B, T, INPUT_SIZE, HIDDEN = 2, 8, 4, 32

    key = jax.random.PRNGKey(0)
    k_x, k_p = jax.random.split(key)
    x = jax.random.normal(k_x, (B, T, INPUT_SIZE), dtype=jnp.float32)
    params = init_params(k_p, INPUT_SIZE, HIDDEN)

    padded = prepare_params(params)          # one-time, off the call path
    padded = jax.tree_util.tree_map(jax.block_until_ready, padded)

    out = recurrent_net_forward(x, padded)
    out = jax.block_until_ready(out)

    ref = reference_forward(x, params)
    assert out.shape == (B, 1), out.shape
    assert jnp.allclose(out, ref, atol=1e-5, rtol=1e-5), (out, ref)

    print("KERNEL_OK")
</pallas_src>

<mosaic_0001>
module attributes {stable_mosaic.version = 11 : i64} {
  func.func @rnn_kernel(%arg0: memref<64x4xf32, #tpu.memory_space<vmem>>, %arg1: memref<4x128xf32, #tpu.memory_space<vmem>>, %arg2: memref<128x128xf32, #tpu.memory_space<vmem>>, %arg3: memref<1x128xf32, #tpu.memory_space<vmem>>, %arg4: memref<128x128xf32, #tpu.memory_space<vmem>>, %arg5: memref<1x128xf32, #tpu.memory_space<vmem>>, %arg6: memref<8x128xf32, #tpu.memory_space<vmem>>) attributes {dimension_semantics = [], scalar_prefetch = 0 : i64, scratch_operands = 0 : i64, tpu.core_type = #tpu.core_type<tc>} {
    %c0 = arith.constant 0 : index
    %c0_0 = arith.constant 0 : index
    %0 = vector.load %arg0[%c0, %c0_0] : memref<64x4xf32, #tpu.memory_space<vmem>>, vector<64x4xf32>
    %c0_1 = arith.constant 0 : index
    %c0_2 = arith.constant 0 : index
    %1 = vector.load %arg1[%c0_1, %c0_2] : memref<4x128xf32, #tpu.memory_space<vmem>>, vector<4x128xf32>
    %cst = arith.constant dense<0.000000e+00> : vector<64x128xf32>
    %2 = tpu.matmul %0, %1, %cst {dimension_numbers = #tpu.dot_dimension_numbers<[1], [0], [0], [1], [0, 0, 1, 1], [], []>, precision = #tpu.contract_precision<fp32>} : vector<64x4xf32>, vector<4x128xf32>, vector<64x128xf32> -> vector<64x128xf32>
    %c0_3 = arith.constant 0 : index
    %c0_4 = arith.constant 0 : index
    %3 = vector.load %arg3[%c0_3, %c0_4] : memref<1x128xf32, #tpu.memory_space<vmem>>, vector<1x128xf32>
    %4 = vector.broadcast %3 : vector<1x128xf32> to vector<64x128xf32>
    %5 = arith.addf %2, %4 : vector<64x128xf32>
    %c0_5 = arith.constant 0 : index
    %c0_6 = arith.constant 0 : index
    %6 = vector.load %arg2[%c0_5, %c0_6] : memref<128x128xf32, #tpu.memory_space<vmem>>, vector<128x128xf32>
    %cst_7 = arith.constant 0.000000e+00 : f32
    %7 = vector.broadcast %cst_7 : f32 to vector<8x128xf32>
    %cst_8 = arith.constant dense<0.000000e+00> : vector<8x128xf32>
    %8 = tpu.matmul %7, %6, %cst_8 {dimension_numbers = #tpu.dot_dimension_numbers<[1], [0], [0], [1], [0, 0, 1, 1], [], []>, precision = #tpu.contract_precision<fp32>} : vector<8x128xf32>, vector<128x128xf32>, vector<8x128xf32> -> vector<8x128xf32>
    %9 = vector.extract_strided_slice %5 {offsets = [0, 0], sizes = [8, 128], strides = [1, 1]} : vector<64x128xf32> to vector<8x128xf32>
    %10 = arith.addf %9, %8 : vector<8x128xf32>
    %11 = math.tanh %10 : vector<8x128xf32>
    %cst_9 = arith.constant dense<0.000000e+00> : vector<8x128xf32>
    %12 = tpu.matmul %11, %6, %cst_9 {dimension_numbers = #tpu.dot_dimension_numbers<[1], [0], [0], [1], [0, 0, 1, 1], [], []>, precision = #tpu.contract_precision<fp32>} : vector<8x128xf32>, vector<128x128xf32>, vector<8x128xf32> -> vector<8x128xf32>
    %13 = vector.extract_strided_slice %5 {offsets = [8, 0], sizes = [8, 128], strides = [1, 1]} : vector<64x128xf32> to vector<8x128xf32>
    %14 = arith.addf %13, %12 : vector<8x128xf32>
    %15 = math.tanh %14 : vector<8x128xf32>
    %cst_10 = arith.constant dense<0.000000e+00> : vector<8x128xf32>
    %16 = tpu.matmul %15, %6, %cst_10 {dimension_numbers = #tpu.dot_dimension_numbers<[1], [0], [0], [1], [0, 0, 1, 1], [], []>, precision = #tpu.contract_precision<fp32>} : vector<8x128xf32>, vector<128x128xf32>, vector<8x128xf32> -> vector<8x128xf32>
    %17 = vector.extract_strided_slice %5 {offsets = [16, 0], sizes = [8, 128], strides = [1, 1]} : vector<64x128xf32> to vector<8x128xf32>
    %18 = arith.addf %17, %16 : vector<8x128xf32>
    %19 = math.tanh %18 : vector<8x128xf32>
    %cst_11 = arith.constant dense<0.000000e+00> : vector<8x128xf32>
    %20 = tpu.matmul %19, %6, %cst_11 {dimension_numbers = #tpu.dot_dimension_numbers<[1], [0], [0], [1], [0, 0, 1, 1], [], []>, precision = #tpu.contract_precision<fp32>} : vector<8x128xf32>, vector<128x128xf32>, vector<8x128xf32> -> vector<8x128xf32>
    %21 = vector.extract_strided_slice %5 {offsets = [24, 0], sizes = [8, 128], strides = [1, 1]} : vector<64x128xf32> to vector<8x128xf32>
    %22 = arith.addf %21, %20 : vector<8x128xf32>
    %23 = math.tanh %22 : vector<8x128xf32>
    %cst_12 = arith.constant dense<0.000000e+00> : vector<8x128xf32>
    %24 = tpu.matmul %23, %6, %cst_12 {dimension_numbers = #tpu.dot_dimension_numbers<[1], [0], [0], [1], [0, 0, 1, 1], [], []>, precision = #tpu.contract_precision<fp32>} : vector<8x128xf32>, vector<128x128xf32>, vector<8x128xf32> -> vector<8x128xf32>
    %25 = vector.extract_strided_slice %5 {offsets = [32, 0], sizes = [8, 128], strides = [1, 1]} : vector<64x128xf32> to vector<8x128xf32>
    %26 = arith.addf %25, %24 : vector<8x128xf32>
    %27 = math.tanh %26 : vector<8x128xf32>
    %cst_13 = arith.constant dense<0.000000e+00> : vector<8x128xf32>
    %28 = tpu.matmul %27, %6, %cst_13 {dimension_numbers = #tpu.dot_dimension_numbers<[1], [0], [0], [1], [0, 0, 1, 1], [], []>, precision = #tpu.contract_precision<fp32>} : vector<8x128xf32>, vector<128x128xf32>, vector<8x128xf32> -> vector<8x128xf32>
    %29 = vector.extract_strided_slice %5 {offsets = [40, 0], sizes = [8, 128], strides = [1, 1]} : vector<64x128xf32> to vector<8x128xf32>
    %30 = arith.addf %29, %28 : vector<8x128xf32>
    %31 = math.tanh %30 : vector<8x128xf32>
    %cst_14 = arith.constant dense<0.000000e+00> : vector<8x128xf32>
    %32 = tpu.matmul %31, %6, %cst_14 {dimension_numbers = #tpu.dot_dimension_numbers<[1], [0], [0], [1], [0, 0, 1, 1], [], []>, precision = #tpu.contract_precision<fp32>} : vector<8x128xf32>, vector<128x128xf32>, vector<8x128xf32> -> vector<8x128xf32>
    %33 = vector.extract_strided_slice %5 {offsets = [48, 0], sizes = [8, 128], strides = [1, 1]} : vector<64x128xf32> to vector<8x128xf32>
    %34 = arith.addf %33, %32 : vector<8x128xf32>
    %35 = math.tanh %34 : vector<8x128xf32>
    %cst_15 = arith.constant dense<0.000000e+00> : vector<8x128xf32>
    %36 = tpu.matmul %35, %6, %cst_15 {dimension_numbers = #tpu.dot_dimension_numbers<[1], [0], [0], [1], [0, 0, 1, 1], [], []>, precision = #tpu.contract_precision<fp32>} : vector<8x128xf32>, vector<128x128xf32>, vector<8x128xf32> -> vector<8x128xf32>
    %37 = vector.extract_strided_slice %5 {offsets = [56, 0], sizes = [8, 128], strides = [1, 1]} : vector<64x128xf32> to vector<8x128xf32>
    %38 = arith.addf %37, %36 : vector<8x128xf32>
    %39 = math.tanh %38 : vector<8x128xf32>
    %c0_16 = arith.constant 0 : index
    %c0_17 = arith.constant 0 : index
    %40 = vector.load %arg4[%c0_16, %c0_17] : memref<128x128xf32, #tpu.memory_space<vmem>>, vector<128x128xf32>
    %cst_18 = arith.constant dense<0.000000e+00> : vector<8x128xf32>
    %41 = tpu.matmul %39, %40, %cst_18 {dimension_numbers = #tpu.dot_dimension_numbers<[1], [0], [0], [1], [0, 0, 1, 1], [], []>, precision = #tpu.contract_precision<fp32>} : vector<8x128xf32>, vector<128x128xf32>, vector<8x128xf32> -> vector<8x128xf32>
    %c0_19 = arith.constant 0 : index
    %c0_20 = arith.constant 0 : index
    %42 = vector.load %arg5[%c0_19, %c0_20] : memref<1x128xf32, #tpu.memory_space<vmem>>, vector<1x128xf32>
    %43 = vector.broadcast %42 : vector<1x128xf32> to vector<8x128xf32>
    %44 = arith.addf %41, %43 : vector<8x128xf32>
    %c0_21 = arith.constant 0 : index
    %c0_22 = arith.constant 0 : index
    %45 = vector.load %arg6[%c0_21, %c0_22] : memref<8x128xf32, #tpu.memory_space<vmem>>, vector<8x128xf32>
    tpu.vector_store %arg6[%c0_21, %c0_22], %44 {strides = array<i32>} : memref<8x128xf32, #tpu.memory_space<vmem>>, vector<8x128xf32>,
    return
  }
}

</mosaic_0001>

<bundles_post_ra>
// kernel: recurrent_net_forward.1
= control target key start
LH: loop header
LB: loop body
LE: loop exit
PB: predicated region body
PF: predicated region fallthrough
CT: control target
= control target key end

     0   :  { %11 = vsyncpa [#allocation3], 0  ;;  %s5068_s0 = inlined_call_operand.vmem [shape: f32[64,4], index: 0, kind: input, shape index: {}]   ;;  %s5069_s1 = inlined_call_operand.vmem [shape: f32[4,128], index: 1, kind: input, shape index: {}]   ;;  %s5070_s2 = inlined_call_operand.hbm [shape: f32[128,128], index: 2, kind: input, shape index: {}]   ;;  %s5071_s3 = inlined_call_operand.vmem [shape: f32[1,128], index: 3, kind: input, shape index: {}]   ;;  %s5072_s4 = inlined_call_operand.hbm [shape: f32[128,128], index: 4, kind: input, shape index: {}]   ;;  %s5073_s5 = inlined_call_operand.vmem [shape: f32[1,128], index: 5, kind: input, shape index: {}]   ;;  %s5074_s6 = inlined_call_operand.vmem [shape: f32[8,128], index: 6, kind: output, shape index: {}]  }
   0x1   :  { %s21_s23 = sshll.u32 %s5070_s2, 4  ;;  %s22_s23 = int_to_ptr.hbm [resolvable:$true] %s21_s23 }
   0x2   :  { %12 = vsyncpa [#allocation5], 0  ;;  %s3652_s24 = smov [#allocation2]   ;;  %s36_s28 = sshll.u32 %s5072_s4, 4  ;;  %s37_s28 = int_to_ptr.hbm [resolvable:$true] %s36_s28 }
   0x3   :  { %s23_s25 = sshll.u32 %s3652_s24, 4  ;;  %s3653_s29 = smov 128   ;;  %s24_s25 = int_to_ptr.vmem [resolvable:$true] %s23_s25 }
   0x4   :  { %s3654_s30 = smov 8   ;;  %s3655_s7 = smov [#allocation4]  }
   0x5   :  { %29 = dma.hbm_to_vmem [thread:$0]  %s22_s23, 2048, %s24_s25, [#allocation3], %s3653_s29, %s3653_s29, %s3654_s30  }
   0x6   :  { %s38_s8 = sshll.u32 %s3655_s7, 4  ;;  %s39_s8 = int_to_ptr.vmem [resolvable:$true] %s38_s8 }
   0x7   :  { %44 = dma.hbm_to_vmem [thread:$0]  %s37_s28, 2048, %s39_s8, [#allocation5], %s3653_s29, %s3653_s29, %s3654_s30  }
   0x8   :  { %3648 = dma.done.wait [#allocation3], 2048  }
   0x9   :  { %3649 = vsyncadd [#allocation3], 4294965248 }
   0xa   :  { %3650 = dma.done.wait [#allocation5], 2048  }
   0xb   :  { %3651 = vsyncadd [#allocation5], 4294965248  ;;  %vm93_vm0 = vcmask 1043456   ;;  %vm68_vm1 = vcmask 31744   ;;  %v63_v0 = vld [vmem:[%s5069_s1] sm:$0xf] }
   0xc   :  { %v55_v1 = vld [vmem:[%s5068_s0] sm:$0xff]  ;;  %v61_v2 = vld [vmem:[%s5068_s0 + $0x30] sm:$0xff]  ;;  %v95_v3 = vsel %vm93_vm0, %v63_v0, 0  ;;  %v56_v6 = vld [vmem:[%s5068_s0 + $0x8] sm:$0xff] }
   0xd   :  { %v70_v4 = vsel %vm68_vm1, %v55_v1, 0  ;;  %v88_v5 = vsel %vm68_vm1, %v61_v2, 0  ;;  %v62_v7 = vld [vmem:[%s5068_s0 + $0x38] sm:$0xff]  ;;  %v57_v8 = vld [vmem:[%s5068_s0 + $0x10] sm:$0xff]  ;;  %v112_v9 = vand.u32 4294901760, %v95_v3  ;;  %v73_v12 = vsel %vm68_vm1, %v56_v6, 0 }
   0xe   :  { %v3718_v10 = vand.u32 4294901760, %v70_v4  ;;  %v3720_v11 = vand.u32 4294901760, %v88_v5  ;;  %v3723_v13 = vand.u32 4294901760, %v73_v12  ;;  %v91_v14 = vsel %vm68_vm1, %v62_v7, 0  ;;  %v475_v21 = vld [vmem:[#allocation2 + $0x78] sm:$0xff]  ;;  %v474_v34 = vld [vmem:[#allocation2 + $0x70] sm:$0xff] }
   0xf   :  { %v76_v15 = vsel %vm68_vm1, %v57_v8, 0  ;;  %113 = vmatpush.msra.mxu0 %v112_v9  ;;  %3575 = vmatpush.msra.mxu2 %v112_v9  ;;  %v195_v18 = vsub.f32 %v95_v3, %v112_v9  ;;  %v3733_v19 = vand.u32 4294901760, %v91_v14  ;;  %v3746_v28 = vand.u32 4294901760, %v475_v21  ;;  %v58_v33 = vld [vmem:[%s5068_s0 + $0x18] sm:$0xff]  ;;  %v473_v35 = vld [vmem:[#allocation2 + $0x68] sm:$0xff]  ;;  %v472_v42 = vld [vmem:[#allocation2 + $0x60] sm:$0xff] }
  0x10   :  { %5171 = vst [vmem:[#allocation8_spill] sm:$0xff] %v3720_v11  ;;  %v3728_v16 = vsub.f32 %v70_v4, %v3718_v10  ;;  %v3731_v17 = vsub.f32 %v88_v5, %v3720_v11  ;;  %v3736_v20 = vsub.f32 %v73_v12, %v3723_v13  ;;  %v3744_v27 = vand.u32 4294901760, %v76_v15  ;;  %v471_v47 = vld [vmem:[#allocation2 + $0x58] sm:$0xff]  ;;  %v59_v49 = vld [vmem:[%s5068_s0 + $0x20] sm:$0xff]  ;;  %v470_v57 = vld [vmem:[#allocation2 + $0x50] sm:$0xff] }
  0x11   :  { %5172 = vst [vmem:[#allocation9_spill] sm:$0xff] %v3733_v19  ;;  %v196_v24 = vand.u32 4294901760, %v195_v18  ;;  %v3741_v25 = vsub.f32 %v91_v14, %v3733_v19  ;;  %250 = vmatpush.msrb.mxu2 %v195_v18  ;;  %v79_v41 = vsel %vm68_vm1, %v58_v33, 0  ;;  %v3769_v44 = vsub.f32 %v475_v21, %v3746_v28  ;;  %v469_v2 = vld [vmem:[#allocation2 + $0x48] sm:$0xff]  ;;  %v468_v14 = vld [vmem:[#allocation2 + $0x40] sm:$0xff] }
  0x12   :  { %v116_v22 = vand.u32 4294901760, %v3728_v16  ;;  %v5076_v23 = vand.u32 4294901760, %v3731_v17  ;;  %v5079_v26 = vand.u32 4294901760, %v3736_v20  ;;  %v3762_v40 = vsub.f32 %v76_v15, %v3744_v27 }
  0x13   :  { %376 = vmatpush.msrb.mxu0 %v196_v24  ;;  %v197_v31 = vsub.f32 %v195_v18, %v196_v24  ;;  %v5075_v32 = vand.u32 4294901760, %v3741_v25  ;;  %v3771_v45 = vand.u32 4294901760, %v474_v34  ;;  %v3773_v46 = vand.u32 4294901760, %v473_v35 }
  0x14   :  { %v117_v29 = vsub.f32 %v3728_v16, %v116_v22  ;;  %v165_v30 = vsub.f32 %v3731_v17, %v5076_v23  ;;  %v125_v39 = vsub.f32 %v3736_v20, %v5079_v26  ;;  %v3777_v48 = vand.u32 4294901760, %v79_v41  ;;  %v464_v23 = vld [vmem:[#allocation2 + $0x20] sm:$0xff]  ;;  %v463_v26 = vld [vmem:[#allocation2 + $0x18] sm:$0xff] }
  0x15   :  { %v198_v38 = vand.u32 4294901760, %v197_v31  ;;  %v173_v43 = vsub.f32 %v3741_v25, %v5075_v32  ;;  %v3783_v50 = vand.u32 4294901760, %v3769_v44  ;;  %v3786_v51 = vsub.f32 %v474_v34, %v3771_v45  ;;  %v467_v34 = vld [vmem:[#allocation2 + $0x38] sm:$0xff] }
  0x16   :  { %v118_v36 = vand.u32 4294901760, %v117_v29  ;;  %v166_v37 = vand.u32 4294901760, %v165_v30  ;;  %5173 = vst [vmem:[#allocation10_spill] sm:$0xff] %v3777_v48  ;;  %v3788_v52 = vand.u32 4294901760, %v472_v42  ;;  %v126_v53 = vand.u32 4294901760, %v125_v39 }
  0x17   :  { %199 = vmatpush.msra.mxu1 %v198_v38  ;;  %3576 = vmatpush.msra.mxu3 %v198_v38  ;;  %5174 = vst [vmem:[#allocation11_spill] sm:$0xff] %v3783_v50  ;;  %v5078_v54 = vand.u32 4294901760, %v3762_v40  ;;  %v3792_v55 = vsub.f32 %v473_v35, %v3773_v46  ;;  %v3794_v56 = vand.u32 4294901760, %v471_v47  ;;  %v174_v58 = vand.u32 4294901760, %v173_v43  ;;  %v466_v43 = vld [vmem:[#allocation2 + $0x30] sm:$0xff] }
  0x18   :  { %119 = vmatmul.f32.vlgmr.msra.gmra.mxu0 %v118_v36  ;;  %167 = vmatmul.f32.vlgmr.msra.gmra.mxu2 %v166_v37  ;;  %v515_v59 = vsub.f32 %v3769_v44, %v3783_v50  ;;  %v3800_v60 = vand.u32 4294901760, %v3786_v51  ;;  %v3803_v61 = vsub.f32 %v472_v42, %v3788_v52  ;;  %v82_v62 = vsel %vm68_vm1, %v59_v49, 0 }
  0x19   :  { %201 = vmatmul.f32.vlgmr.msra.gmra.mxu1 %v3718_v10  ;;  %225 = vmatmul.f32.vlgmr.msra.gmra.mxu3 %v3720_v11  ;;  %v3808_v63 = vand.u32 4294901760, %v3792_v55  ;;  %v3810_v0 = vand.u32 4294901760, %v470_v57  ;;  %v3813_v1 = vsub.f32 %v471_v47, %v3794_v56  ;;  %v3817_v3 = vsub.f32 %v79_v41, %v3777_v48  ;;  %v461_v11 = vld [vmem:[#allocation2 + $0x8] sm:$0xff] }
  0x1a   :  { %426 = vmatpush.msrb.mxu1 %v112_v9  ;;  %308 = vmatpush.msrb.mxu3 %v112_v9  ;;  %5175 = vst [vmem:[#allocation12_spill] sm:$0xff] %v3800_v60  ;;  %v3819_v4 = vand.u32 4294901760, %v515_v59  ;;  %v521_v5 = vsub.f32 %v3786_v51, %v3800_v60  ;;  %v3825_v6 = vand.u32 4294901760, %v3803_v61  ;;  %v3833_v9 = vand.u32 4294901760, %v469_v2 }
  0x1b   :  { %477 = vmatpush.msra.mxu2 %v3746_v28  ;;  %703 = vmatpush.msra.mxu0 %v3783_v50  ;;  %5176 = vst [vmem:[#allocation13_spill] sm:$0xff] %v3808_v63  ;;  %v527_v7 = vsub.f32 %v3792_v55, %v3808_v63  ;;  %v3831_v8 = vand.u32 4294901760, %v3813_v1  ;;  %v3836_v12 = vsub.f32 %v470_v57, %v3810_v0  ;;  %v3846_v24 = vand.u32 4294901760, %v468_v14 }
  0x1c   :  { %769 = vmatpush.msra.mxu1 %v3746_v28  ;;  %5177 = vst [vmem:[#allocation14_spill] sm:$0xff] %v3819_v4  ;;  %v133_v15 = vsub.f32 %v3762_v40, %v5078_v54  ;;  %v3842_v18 = vand.u32 4294901760, %v521_v5  ;;  %v533_v21 = vsub.f32 %v3803_v61, %v3825_v6  ;;  %517 = vmatpush.msra.mxu3 %v3819_v4  ;;  %v5077_v35 = vand.u32 4294901760, %v3817_v3 }
  0x1d   :  { %479 = vmatpush.msra.mxu2 %v3771_v45  ;;  %5178 = vst [vmem:[#allocation15_spill] sm:$0xff] %v3825_v6  ;;  %707 = vmatpush.msra.mxu0 %v3800_v60  ;;  %v3850_v29 = vand.u32 4294901760, %v527_v7  ;;  %v539_v30 = vsub.f32 %v3813_v1, %v3831_v8  ;;  %v3855_v31 = vand.u32 4294901760, %v3836_v12  ;;  %v3858_v33 = vsub.f32 %v469_v2, %v3833_v9  ;;  %v465_v2 = vld [vmem:[#allocation2 + $0x28] sm:$0xff] }
  0x1e   :  { %5179 = vst [vmem:[#allocation16_spill] sm:$0xff] %v3831_v8  ;;  %771 = vmatpush.msra.mxu1 %v3771_v45  ;;  %v3863_v36 = vand.u32 4294901760, %v467_v34  ;;  %v3866_v37 = vsub.f32 %v468_v14, %v3846_v24  ;;  %v3868_v38 = vand.u32 4294901760, %v82_v62  ;;  %523 = vmatpush.msra.mxu3 %v3842_v18  ;;  %v3872_v39 = vand.u32 4294901760, %v533_v21  ;;  %v60_v7 = vld [vmem:[%s5068_s0 + $0x28] sm:$0xff] }
  0x1f   :  { %5180 = vst [vmem:[#allocation17_spill] sm:$0xff] %v3842_v18  ;;  %481 = vmatpush.msra.mxu2 %v3773_v46  ;;  %v545_v41 = vsub.f32 %v3836_v12, %v3855_v31  ;;  %v3877_v42 = vand.u32 4294901760, %v3858_v33  ;;  %v134_v47 = vand.u32 4294901760, %v133_v15  ;;  %711 = vmatpush.msra.mxu0 %v3808_v63  ;;  %v141_v5 = vsub.f32 %v3817_v3, %v5077_v35 }
  0x20   :  { %127 = vmatmul.f32.gmra.mxu0 %v126_v53  ;;  %175 = vmatmul.f32.gmra.mxu2 %v174_v58  ;;  %5181 = vst [vmem:[#allocation18_spill] sm:$0xff] %v3850_v29  ;;  %v3880_v49 = vand.u32 4294901760, %v3866_v37  ;;  %v3882_v53 = vand.u32 4294901760, %v466_v43  ;;  %v3885_v57 = vsub.f32 %v467_v34, %v3863_v36  ;;  %v3891_v58 = vand.u32 4294901760, %v539_v30 }
  0x21   :  { %5182 = vst [vmem:[#allocation19_spill] sm:$0xff] %v3855_v31  ;;  %205 = vmatmul.f32.gmra.mxu1 %v3723_v13  ;;  %229 = vmatmul.f32.gmra.mxu3 %v3733_v19  ;;  %v551_v59 = vsub.f32 %v3858_v33, %v3877_v42  ;;  %v3904_v15 = vand.u32 4294901760, %v465_v2  ;;  %v3912_v30 = vsub.f32 %v82_v62, %v3868_v38  ;;  %v3916_v34 = vand.u32 4294901760, %v545_v41 }
  0x22   :  { %483 = vmatpush.msra.mxu2 %v3788_v52  ;;  %5183 = vst [vmem:[#allocation20_spill] sm:$0xff] %v3872_v39  ;;  %773 = vmatpush.msra.mxu1 %v3773_v46  ;;  %v3902_v14 = vand.u32 4294901760, %v3885_v57  ;;  %v3907_v21 = vsub.f32 %v466_v43, %v3882_v53  ;;  %v557_v32 = vsub.f32 %v3866_v37, %v3880_v49  ;;  %v3924_v35 = vand.u32 4294901760, %v464_v23 }
  0x23   :  { %5184 = vst [vmem:[#allocation21_spill] sm:$0xff] %v3877_v42  ;;  %529 = vmatpush.msra.mxu3 %v3850_v29  ;;  %715 = vmatpush.msra.mxu0 %v3825_v6  ;;  %v85_v62 = vsel %vm68_vm1, %v60_v7, 0  ;;  %v3929_v41 = vand.u32 4294901760, %v551_v59  ;;  %v142_v6 = vand.u32 4294901760, %v141_v5  ;;  %v3939_v7 = vand.u32 4294901760, %v463_v26 }
  0x24   :  { %5185 = vst [vmem:[#allocation22_spill] sm:$0xff] %v3880_v49  ;;  %485 = vmatpush.msra.mxu2 %v3794_v56  ;;  %775 = vmatpush.msra.mxu1 %v3788_v52  ;;  %v3922_v43 = vand.u32 4294901760, %v3907_v21  ;;  %v563_v54 = vsub.f32 %v3885_v57, %v3902_v14  ;;  %v3942_v63 = vsub.f32 %v464_v23, %v3924_v35  ;;  %v3954_v5 = vand.u32 4294901760, %v85_v62 }
  0x25   :  { %5186 = vst [vmem:[#allocation23_spill] sm:$0xff] %v3891_v58  ;;  %535 = vmatpush.msra.mxu3 %v3872_v39  ;;  %v3962_v59 = vsub.f32 %v463_v26, %v3939_v7  ;;  %719 = vmatpush.msra.mxu0 %v3831_v8 }
  0x26   :  { %487 = vmatpush.msra.mxu2 %v3810_v0  ;;  %5187 = vst [vmem:[#allocation24_spill] sm:$0xff] %v3916_v34  ;;  %v569_v60 = vsub.f32 %v3907_v21, %v3922_v43  ;;  %v3957_v23 = vand.u32 4294901760, %v3942_v63  ;;  %777 = vmatpush.msra.mxu1 %v3794_v56 }
  0x27   :  { %541 = vmatpush.msra.mxu3 %v3891_v58  ;;  %5188 = vst [vmem:[#allocation25_spill] sm:$0xff] %v3929_v41  ;;  %v3975_v58 = vand.u32 4294901760, %v461_v11  ;;  %723 = vmatpush.msra.mxu0 %v3855_v31  ;;  %v3993_v31 = vsub.f32 %v85_v62, %v3954_v5  ;;  %v5205_v62 = vand.u32 4294901760, %v3736_v20 }
  0x28   :  { %135 = vmatmul.f32.gmra.mxu0 %v134_v47  ;;  %253 = vmatmul.f32.vlgmr.msrb.gmra.mxu2 %v3728_v16  ;;  %v3934_v47 = vsub.f32 %v465_v2, %v3904_v15  ;;  %5190 = vst [vmem:[#allocation27_spill] sm:$0xff] %v3942_v63  ;;  %v3947_v2 = vand.u32 4294901760, %v557_v32  ;;  %v3968_v32 = vand.u32 4294901760, %v563_v54  ;;  %v3984_v54 = vand.u32 4294901760, %v569_v60 }
  0x29   :  { %489 = vmatpush.msra.mxu2 %v3833_v9  ;;  %209 = vmatmul.f32.gmra.mxu1 %v3744_v27  ;;  %5193 = vst [vmem:[#allocation30_spill] sm:$0xff] %v3957_v23  ;;  %v581_v8 = vsub.f32 %v3942_v63, %v3957_v23  ;;  %v4007_v18 = vsub.f32 %v461_v11, %v3975_v58 }
  0x2a   :  { %5189 = vst [vmem:[#allocation26_spill] sm:$0xff] %v3934_v47  ;;  %312 = vmatmul.f32.vlgmr.msrb.gmra.mxu3 %v116_v22  ;;  %v3952_v16 = vand.u32 4294901760, %v3934_v47  ;;  %v462_v22 = vld [vmem:[#allocation2 + $0x10] sm:$0xff]  ;;  %779 = vmatpush.msra.mxu1 %v3810_v0 }
  0x2b   :  { %547 = vmatpush.msra.mxu3 %v3916_v34  ;;  %491 = vmatpush.msra.mxu2 %v3846_v24  ;;  %5191 = vst [vmem:[#allocation28_spill] sm:$0xff] %v3947_v2  ;;  %v3959_v50 = vand.u32 4294901760, %v462_v22  ;;  %v3973_v34 = vand.u32 4294901760, %v3962_v59  ;;  %v4022_v11 = vand.u32 4294901760, %v4007_v18 }
  0x2c   :  { %5192 = vst [vmem:[#allocation29_spill] sm:$0xff] %v3952_v16  ;;  %v575_v19 = vsub.f32 %v3934_v47, %v3952_v16  ;;  %727 = vmatpush.msra.mxu0 %v3877_v42  ;;  %781 = vmatpush.msra.mxu1 %v3833_v9 }
  0x2d   :  { %5194 = vst [vmem:[#allocation31_spill] sm:$0xff] %v3962_v59  ;;  %553 = vmatpush.msra.mxu3 %v3929_v41  ;;  %493 = vmatpush.msra.mxu2 %v3863_v36  ;;  %v3978_v26 = vsub.f32 %v462_v22, %v3959_v50  ;;  %v460_v41 = vld [vmem:[#allocation2] sm:$0xff]  ;;  %v5200_v22 = vand.u32 4294901760, %v3912_v30 }
  0x2e   :  { %5195 = vst [vmem:[#allocation32_spill] sm:$0xff] %v3968_v32  ;;  %v3998_v29 = vand.u32 4294901760, %v460_v41  ;;  %v4002_v60 = vand.u32 4294901760, %v575_v19  ;;  %v4017_v19 = vand.u32 4294901760, %v581_v8  ;;  %731 = vmatpush.msra.mxu0 %v3880_v49  ;;  %783 = vmatpush.msra.mxu1 %v3846_v24 }
  0x2f   :  { %5196 = vst [vmem:[#allocation33_spill] sm:$0xff] %v3973_v34  ;;  %559 = vmatpush.msra.mxu3 %v3947_v2  ;;  %495 = vmatpush.msra.mxu2 %v3882_v53  ;;  %v149_v39 = vsub.f32 %v3912_v30, %v5200_v22  ;;  %v3996_v2 = vand.u32 4294901760, %v3978_v26 }
  0x30   :  { %5197 = vst [vmem:[#allocation34_spill] sm:$0xff] %v3975_v58  ;;  %143 = vmatmul.f32.gmra.mxu0 %v142_v6  ;;  %258 = vmatmul.f32.gmra.mxu2 %v3736_v20  ;;  %v587_v6 = vsub.f32 %v3962_v59, %v3973_v34  ;;  %v4013_v22 = vsub.f32 %v460_v41, %v3998_v29 }
  0x31   :  { %5198 = vst [vmem:[#allocation35_spill] sm:$0xff] %v3978_v26  ;;  %565 = vmatpush.msra.mxu3 %v3968_v32  ;;  %497 = vmatpush.msra.mxu2 %v3904_v15  ;;  %v593_v32 = vsub.f32 %v3978_v26, %v3996_v2  ;;  %v150_v4 = vand.u32 4294901760, %v149_v39  ;;  %v599_v41 = vsub.f32 %v4007_v18, %v4022_v11 }
  0x32   :  { %5199 = vst [vmem:[#allocation36_spill] sm:$0xff] %v3984_v54  ;;  %213 = vmatmul.f32.gmra.mxu1 %v3777_v48  ;;  %318 = vmatmul.f32.gmra.mxu3 %v5205_v62  ;;  %v156_v48 = vand.u32 4294901760, %v3993_v31  ;;  %v4026_v20 = vand.u32 4294901760, %v4013_v22  ;;  %v4032_v8 = vand.u32 4294901760, %v587_v6 }
  0x33   :  { %5201 = vst [vmem:[#allocation37_spill] sm:$0xff] %v3996_v2  ;;  %571 = vmatpush.msra.mxu3 %v3984_v54  ;;  %499 = vmatpush.msra.mxu2 %v3924_v35  ;;  %v4040_v39 = vand.u32 4294901760, %v593_v32  ;;  %v4050_v49 = vand.u32 4294901760, %v599_v41  ;;  %v5213_v32 = vand.u32 4294901760, %v3762_v40  ;;  %v5226_v41 = vld [vmem:[#allocation25_spill] sm:$0xff] }
  0x34   :  { %5202 = vst [vmem:[#allocation38_spill] sm:$0xff] %v3998_v29  ;;  %v605_v62 = vsub.f32 %v4013_v22, %v4026_v20  ;;  %v157_v6 = vsub.f32 %v3993_v31, %v156_v48  ;;  %735 = vmatpush.msra.mxu0 %v3902_v14  ;;  %785 = vmatpush.msra.mxu1 %v3863_v36 }
  0x35   :  { %5203 = vst [vmem:[#allocation39_spill] sm:$0xff] %v4002_v60  ;;  %577 = vmatpush.msra.mxu3 %v4002_v60  ;;  %501 = vmatpush.msra.mxu2 %v3939_v7 }
  0x36   :  { %5204 = vst [vmem:[#allocation40_spill] sm:$0xff] %v4007_v18  ;;  %v158_v42 = vand.u32 4294901760, %v157_v6  ;;  %739 = vmatpush.msra.mxu0 %v3922_v43  ;;  %787 = vmatpush.msra.mxu1 %v3882_v53  ;;  %v5229_v6 = vld [vmem:[#allocation32_spill] sm:$0xff] }
  0x37   :  { %5206 = vst [vmem:[#allocation41_spill] sm:$0xff] %v4013_v22  ;;  %583 = vmatpush.msra.mxu3 %v4017_v19  ;;  %503 = vmatpush.msra.mxu2 %v3959_v50 }
  0x38   :  { %5207 = vst [vmem:[#allocation42_spill] sm:$0xff] %v4017_v19  ;;  %151 = vmatmul.f32.gmra.mxu0 %v150_v4  ;;  %263 = vmatmul.f32.gmra.mxu2 %v3762_v40  ;;  %v4057_v4 = vand.u32 4294901760, %v605_v62  ;;  %v5215_v40 = vand.u32 4294901760, %v3817_v3  ;;  %v5228_v62 = vld [vmem:[#allocation28_spill] sm:$0xff] }
  0x39   :  { %5208 = vst [vmem:[#allocation43_spill] sm:$0xff] %v4022_v11  ;;  %589 = vmatpush.msra.mxu3 %v4032_v8  ;;  %505 = vmatpush.msra.mxu2 %v3975_v58 }
  0x3a   :  { %5209 = vst [vmem:[#allocation44_spill] sm:$0xff] %v4026_v20  ;;  %217 = vmatmul.f32.gmra.mxu1 %v3868_v38  ;;  %324 = vmatmul.f32.gmra.mxu3 %v5213_v32  ;;  %v5230_v32 = vld [vmem:[#allocation9_spill] sm:$0xff] }
  0x3b   :  { %5210 = vst [vmem:[#allocation45_spill] sm:$0xff] %v4032_v8  ;;  %595 = vmatpush.msra.mxu3 %v4040_v39  ;;  %507 = vmatpush.msra.mxu2 %v3998_v29 }
  0x3c   :  { %5211 = vst [vmem:[#allocation46_spill] sm:$0xff] %v4040_v39  ;;  %743 = vmatpush.msra.mxu0 %v3952_v16  ;;  %789 = vmatpush.msra.mxu1 %v3904_v15 }
  0x3d   :  { %5212 = vst [vmem:[#allocation47_spill] sm:$0xff] %v4050_v49  ;;  %614 = vmatpush.msrb.mxu2 %v3769_v44  ;;  %601 = vmatpush.msra.mxu3 %v4050_v49 }
  0x3e   :  { %5214 = vst [vmem:[#allocation48_spill] sm:$0xff] %v4057_v4  ;;  %747 = vmatpush.msra.mxu0 %v3957_v23  ;;  %791 = vmatpush.msra.mxu1 %v3924_v35 }
  0x3f   :  { %617 = vmatpush.msrb.mxu2 %v3786_v51  ;;  %607 = vmatpush.msra.mxu3 %v4057_v4 }
  0x40   :  { %159 = vmatmul.f32.gmra.mxu0 %v158_v42  ;;  %268 = vmatmul.f32.gmra.mxu2 %v3817_v3  ;;  %v5216_v3 = vand.u32 4294901760, %v3912_v30  ;;  %v5224_v42 = vld [vmem:[#allocation23_spill] sm:$0xff] }
  0x41   :  { %665 = vmatpush.msrb.mxu3 %v3746_v28  ;;  %620 = vmatpush.msrb.mxu2 %v3792_v55 }
  0x42   :  { %221 = vmatmul.f32.gmra.mxu1 %v3954_v5  ;;  %330 = vmatmul.f32.gmra.mxu3 %v5215_v40  ;;  %v5231_v40 = vld [vmem:[#allocation11_spill] sm:$0xff] }
  0x43   :  { %667 = vmatpush.msrb.mxu3 %v3771_v45  ;;  %623 = vmatpush.msrb.mxu2 %v3803_v61 }
  0x44   :  { %751 = vmatpush.msra.mxu0 %v3973_v34  ;;  %793 = vmatpush.msra.mxu1 %v3939_v7 }
  0x45   :  { %669 = vmatpush.msrb.mxu3 %v3773_v46  ;;  %626 = vmatpush.msrb.mxu2 %v3813_v1 }
  0x46   :  { %755 = vmatpush.msra.mxu0 %v3996_v2  ;;  %795 = vmatpush.msra.mxu1 %v3959_v50 }
  0x47   :  { %671 = vmatpush.msrb.mxu3 %v3788_v52  ;;  %629 = vmatpush.msrb.mxu2 %v3836_v12 }
  0x48   :  { %273 = vmatmul.f32.gmra.mxu2 %v3912_v30  ;;  %378 = vmatmul.f32.vlgmr.msrb.gmra.mxu0 %v3718_v10  ;;  %v5225_v30 = vld [vmem:[#allocation24_spill] sm:$0xff] }
  0x49   :  { %673 = vmatpush.msrb.mxu3 %v3794_v56  ;;  %632 = vmatpush.msrb.mxu2 %v3858_v33 }
  0x4a   :  { %336 = vmatmul.f32.gmra.mxu3 %v5216_v3  ;;  %428 = vmatmul.f32.vlgmr.msrb.gmra.mxu1 %v3718_v10  ;;  %v5217_v10 = vand.u32 4294901760, %v3731_v17  ;;  %v5232_v3 = vld [vmem:[#allocation12_spill] sm:$0xff] }
  0x4b   :  { %675 = vmatpush.msrb.mxu3 %v3810_v0  ;;  %635 = vmatpush.msrb.mxu2 %v3866_v37 }
  0x4c   :  { %759 = vmatpush.msra.mxu0 %v4022_v11  ;;  %797 = vmatpush.msra.mxu1 %v3975_v58 }
  0x4d   :  { %677 = vmatpush.msrb.mxu3 %v3833_v9  ;;  %638 = vmatpush.msrb.mxu2 %v3885_v57 }
  0x4e   :  { %763 = vmatpush.msra.mxu0 %v4026_v20  ;;  %799 = vmatpush.msra.mxu1 %v3998_v29 }
  0x4f   :  { %679 = vmatpush.msrb.mxu3 %v3846_v24  ;;  %641 = vmatpush.msrb.mxu2 %v3907_v21 }
  0x50   :  { %278 = vmatmul.f32.gmra.mxu2 %v3993_v31  ;;  %382 = vmatmul.f32.gmra.mxu0 %v3723_v13  ;;  %v5222_v31 = vld [vmem:[#allocation18_spill] sm:$0xff] }
  0x51   :  { %681 = vmatpush.msrb.mxu3 %v3863_v36  ;;  %644 = vmatpush.msrb.mxu2 %v3934_v47 }
  0x52   :  { %342 = vmatmul.f32.gmra.mxu3 %v156_v48  ;;  %432 = vmatmul.f32.gmra.mxu1 %v3723_v13  ;;  %v5218_v13 = vld [vmem:[#allocation10_spill] sm:$0xff]  ;;  %v5221_v48 = vld [vmem:[#allocation17_spill] sm:$0xff] }
  0x53   :  { %683 = vmatpush.msrb.mxu3 %v3882_v53  ;;  %647 = vmatpush.msrb.mxu2 %v3942_v63 }
  0x54   :  { %950 = vmatpush.msrb.mxu0 %v3769_v44  ;;  %1003 = vmatpush.msrb.mxu1 %v3746_v28 }
  0x55   :  { %685 = vmatpush.msrb.mxu3 %v3904_v15  ;;  %650 = vmatpush.msrb.mxu2 %v3962_v59 }
  0x56   :  { %953 = vmatpush.msrb.mxu0 %v3786_v51  ;;  %1005 = vmatpush.msrb.mxu1 %v3771_v45 }
  0x57   :  { %687 = vmatpush.msrb.mxu3 %v3924_v35  ;;  %653 = vmatpush.msrb.mxu2 %v3978_v26 }
  0x58   :  { %283 = vmatmul.f32.gmra.mxu2 %v3731_v17  ;;  %386 = vmatmul.f32.gmra.mxu0 %v3744_v27  ;;  %v5219_v17 = vand.u32 4294901760, %v3741_v25 }
  0x59   :  { %689 = vmatpush.msrb.mxu3 %v3939_v7  ;;  %656 = vmatpush.msrb.mxu2 %v4007_v18 }
  0x5a   :  { %348 = vmatmul.f32.gmra.mxu3 %v5217_v10  ;;  %436 = vmatmul.f32.gmra.mxu1 %v3744_v27  ;;  %v3656_v27 = vmov 0.0   ;;  %v5233_v10 = vld [vmem:[#allocation13_spill] sm:$0xff] }
  0x5b   :  { %691 = vmatpush.msrb.mxu3 %v3959_v50  ;;  %659 = vmatpush.msrb.mxu2 %v4013_v22 }
  0x5c   :  { %956 = vmatpush.msrb.mxu0 %v3792_v55  ;;  %1007 = vmatpush.msrb.mxu1 %v3773_v46 }
  0x5d   :  { %693 = vmatpush.msrb.mxu3 %v3975_v58 }
  0x5e   :  { %959 = vmatpush.msrb.mxu0 %v3803_v61  ;;  %1009 = vmatpush.msrb.mxu1 %v3788_v52 }
  0x5f   :  { %695 = vmatpush.msrb.mxu3 %v3998_v29 }
  0x60   :  { %288 = vmatmul.f32.gmra.mxu2 %v3741_v25  ;;  %390 = vmatmul.f32.gmra.mxu0 %v5218_v13  ;;  %v5220_v25 = vld [vmem:[#allocation14_spill] sm:$0xff] }
  0x61   :  { %962 = vmatpush.msrb.mxu0 %v3813_v1  ;;  %1011 = vmatpush.msrb.mxu1 %v3794_v56 }
  0x62   :  { %354 = vmatmul.f32.gmra.mxu3 %v5219_v17  ;;  %440 = vmatmul.f32.gmra.mxu1 %v5218_v13  ;;  %v5234_v13 = vld [vmem:[#allocation15_spill] sm:$0xff]  ;;  %v5235_v17 = vld [vmem:[#allocation16_spill] sm:$0xff] }
  0x63   :  { %965 = vmatpush.msrb.mxu0 %v3836_v12  ;;  %1013 = vmatpush.msrb.mxu1 %v3810_v0 }
  0x65   :  { %968 = vmatpush.msrb.mxu0 %v3858_v33  ;;  %1015 = vmatpush.msrb.mxu1 %v3833_v9 }
  0x67   :  { %971 = vmatpush.msrb.mxu0 %v3866_v37  ;;  %1017 = vmatpush.msrb.mxu1 %v3846_v24 }
  0x68   :  { %394 = vmatmul.f32.gmra.mxu0 %v3868_v38  ;;  %508 = vmatmul.f32.vlgmr.msra.gmra.mxu2 %v3656_v27 }
  0x69   :  { %807 = vmatpush.msra.mxu2 %v3746_v28  ;;  %974 = vmatpush.msrb.mxu0 %v3885_v57 }
  0x6a   :  { %444 = vmatmul.f32.gmra.mxu1 %v3868_v38  ;;  %608 = vmatmul.f32.vlgmr.msra.gmra.mxu3 %v3656_v27  ;;  %v5223_v38 = vld [vmem:[#allocation20_spill] sm:$0xff] }
  0x6b   :  { %852 = vmatpush.msra.mxu3 %v5220_v25  ;;  %809 = vmatpush.msra.mxu2 %v3771_v45 }
  0x6c   :  { %977 = vmatpush.msrb.mxu0 %v3907_v21  ;;  %1019 = vmatpush.msrb.mxu1 %v3863_v36 }
  0x6d   :  { %858 = vmatpush.msra.mxu3 %v5221_v48  ;;  %811 = vmatpush.msra.mxu2 %v3773_v46 }
  0x6e   :  { %980 = vmatpush.msrb.mxu0 %v3934_v47  ;;  %1021 = vmatpush.msrb.mxu1 %v3882_v53 }
  0x6f   :  { %864 = vmatpush.msra.mxu3 %v5222_v31  ;;  %813 = vmatpush.msra.mxu2 %v3788_v52 }
  0x70   :  { %398 = vmatmul.f32.gmra.mxu0 %v3954_v5  ;;  %660 = vmatmul.f32.vlgmr.msrb.gmra.mxu2 %v3656_v27 }
  0x71   :  { %870 = vmatpush.msra.mxu3 %v5223_v38  ;;  %815 = vmatpush.msra.mxu2 %v3794_v56 }
  0x72   :  { %448 = vmatmul.f32.gmra.mxu1 %v3954_v5  ;;  %696 = vmatmul.f32.vlgmr.msrb.gmra.mxu3 %v3656_v27  ;;  %v5227_v5 = vld [vmem:[#allocation8_spill] sm:$0xff] }
  0x73   :  { %876 = vmatpush.msra.mxu3 %v5224_v42  ;;  %817 = vmatpush.msra.mxu2 %v3810_v0 }
  0x74   :  { %1023 = vmatpush.msrb.mxu1 %v3904_v15  ;;  %983 = vmatpush.msrb.mxu0 %v3942_v63 }
  0x75   :  { %882 = vmatpush.msra.mxu3 %v5225_v30  ;;  %819 = vmatpush.msra.mxu2 %v3833_v9 }
  0x76   :  { %986 = vmatpush.msrb.mxu0 %v3962_v59  ;;  %1025 = vmatpush.msrb.mxu1 %v3924_v35 }
  0x77   :  { %888 = vmatpush.msra.mxu3 %v5226_v41  ;;  %821 = vmatpush.msra.mxu2 %v3846_v24 }
  0x78   :  { %402 = vmatmul.f32.gmra.mxu0 %v5227_v5  ;;  %1027 = vmatpush.msrb.mxu1 %v3939_v7 }
  0x79   :  { %894 = vmatpush.msra.mxu3 %v5228_v62  ;;  %823 = vmatpush.msra.mxu2 %v3863_v36 }
  0x7a   :  { %452 = vmatmul.f32.gmra.mxu1 %v5227_v5  ;;  %989 = vmatpush.msrb.mxu0 %v3978_v26 }
  0x7b   :  { %900 = vmatpush.msra.mxu3 %v5229_v6  ;;  %825 = vmatpush.msra.mxu2 %v3882_v53 }
  0x7c   :  { %1029 = vmatpush.msrb.mxu1 %v3959_v50  ;;  %992 = vmatpush.msrb.mxu0 %v4007_v18 }
  0x7d   :  { %906 = vmatpush.msra.mxu3 %v3984_v54  ;;  %827 = vmatpush.msra.mxu2 %v3904_v15 }
  0x7e   :  { %995 = vmatpush.msrb.mxu0 %v4013_v22  ;;  %1031 = vmatpush.msrb.mxu1 %v3975_v58  ;;  %v5238_v22 = vld [vmem:[#allocation22_spill] sm:$0xff] }
  0x7f   :  { %912 = vmatpush.msra.mxu3 %v4002_v60  ;;  %829 = vmatpush.msra.mxu2 %v3924_v35 }
  0x80   :  { %406 = vmatmul.f32.gmra.mxu0 %v5230_v32  ;;  %1033 = vmatpush.msrb.mxu1 %v3998_v29 }
  0x81   :  { %918 = vmatpush.msra.mxu3 %v4017_v19  ;;  %831 = vmatpush.msra.mxu2 %v3939_v7 }
  0x82   :  { %456 = vmatmul.f32.gmra.mxu1 %v5230_v32  ;;  %v5237_v32 = vld [vmem:[#allocation21_spill] sm:$0xff] }
  0x83   :  { %924 = vmatpush.msra.mxu3 %v4032_v8  ;;  %833 = vmatpush.msra.mxu2 %v3959_v50 }
  0x85   :  { %930 = vmatpush.msra.mxu3 %v4040_v39  ;;  %835 = vmatpush.msra.mxu2 %v3975_v58 }
  0x87   :  { %936 = vmatpush.msra.mxu3 %v4050_v49  ;;  %837 = vmatpush.msra.mxu2 %v3998_v29 }
  0x88   :  { %764 = vmatmul.f32.vlgmr.msra.gmra.mxu0 %v3656_v27 }
  0x89   :  { %1044 = vmatpush.msrb.mxu2 %v5231_v40  ;;  %942 = vmatpush.msra.mxu3 %v4057_v4 }
  0x8a   :  { %1150 = vmatpush.msra.mxu0 %v3746_v28  ;;  %800 = vmatmul.f32.vlgmr.msra.gmra.mxu1 %v3656_v27  ;;  %v5236_v27 = vld [vmem:[#allocation19_spill] sm:$0xff] }
  0x8b   :  { %1111 = vmatpush.msrb.mxu3 %v3746_v28  ;;  %1048 = vmatpush.msrb.mxu2 %v5232_v3 }
  0x8c   :  { %1195 = vmatpush.msra.mxu1 %v5220_v25  ;;  %1152 = vmatpush.msra.mxu0 %v3771_v45 }
  0x8d   :  { %1113 = vmatpush.msrb.mxu3 %v3771_v45  ;;  %1052 = vmatpush.msrb.mxu2 %v5233_v10 }
  0x8e   :  { %1201 = vmatpush.msra.mxu1 %v5221_v48  ;;  %1154 = vmatpush.msra.mxu0 %v3773_v46 }
  0x8f   :  { %1115 = vmatpush.msrb.mxu3 %v3773_v46  ;;  %1056 = vmatpush.msrb.mxu2 %v5234_v13 }
  0x90   :  { %1207 = vmatpush.msra.mxu1 %v5222_v31  ;;  %1156 = vmatpush.msra.mxu0 %v3788_v52 }
  0x91   :  { %1117 = vmatpush.msrb.mxu3 %v3788_v52  ;;  %1060 = vmatpush.msrb.mxu2 %v5235_v17 }
  0x92   :  { %1213 = vmatpush.msra.mxu1 %v5223_v38  ;;  %1158 = vmatpush.msra.mxu0 %v3794_v56 }
  0x93   :  { %1119 = vmatpush.msrb.mxu3 %v3794_v56  ;;  %1064 = vmatpush.msrb.mxu2 %v5236_v27 }
  0x94   :  { %1219 = vmatpush.msra.mxu1 %v5224_v42  ;;  %1160 = vmatpush.msra.mxu0 %v3810_v0 }
  0x95   :  { %1121 = vmatpush.msrb.mxu3 %v3810_v0  ;;  %v120_v5 = vpop.f32.mrf.mxu0  ;;  %1068 = vmatpush.msrb.mxu2 %v5237_v32 }
  0x96   :  { %1225 = vmatpush.msra.mxu1 %v5225_v30  ;;  %1162 = vmatpush.msra.mxu0 %v3833_v9  ;;  %v202_v38 = vpop.f32.mrf.mxu1  ;;  %v4247_v30 = vld [vmem:[%s5071_s3] ss:$0 sm:$0xff] }
  0x97   :  { %1123 = vmatpush.msrb.mxu3 %v3833_v9  ;;  %1072 = vmatpush.msrb.mxu2 %v5238_v22 }
  0x98   :  { %1231 = vmatpush.msra.mxu1 %v5226_v41  ;;  %1164 = vmatpush.msra.mxu0 %v3846_v24 }
  0x99   :  { %1125 = vmatpush.msrb.mxu3 %v3846_v24  ;;  %1076 = vmatpush.msrb.mxu2 %v3902_v14 }
  0x9a   :  { %1237 = vmatpush.msra.mxu1 %v5228_v62  ;;  %1166 = vmatpush.msra.mxu0 %v3863_v36 }
  0x9b   :  { %1127 = vmatpush.msrb.mxu3 %v3863_v36  ;;  %v168_v42 = vpop.f32.mrf.mxu2  ;;  %1080 = vmatpush.msrb.mxu2 %v3922_v43 }
  0x9c   :  { %1243 = vmatpush.msra.mxu1 %v5229_v6  ;;  %v169_v41 = vadd.f32 %v4247_v30, %v168_v42  ;;  %1168 = vmatpush.msra.mxu0 %v3882_v53  ;;  %v226_v31 = vpop.f32.mrf.mxu3 }
  0x9d   :  { %1129 = vmatpush.msrb.mxu3 %v3882_v53  ;;  %v128_v62 = vpop.f32.mrf.mxu0  ;;  %1084 = vmatpush.msrb.mxu2 %v3952_v16 }
  0x9e   :  { %1249 = vmatpush.msra.mxu1 %v3984_v54  ;;  %v4258_v18 = vadd.f32 %v226_v31, %v169_v41  ;;  %1170 = vmatpush.msra.mxu0 %v3904_v15  ;;  %v206_v48 = vpop.f32.mrf.mxu1  ;;  %v129_v6 = vadd.f32 %v4247_v30, %v128_v62 }
  0x9f   :  { %1131 = vmatpush.msrb.mxu3 %v3904_v15  ;;  %1088 = vmatpush.msrb.mxu2 %v3957_v23 }
  0xa0   :  { %1255 = vmatpush.msra.mxu1 %v4002_v60  ;;  %1172 = vmatpush.msra.mxu0 %v3924_v35  ;;  %v207_v25 = vadd.f32 %v206_v48, %v129_v6 }
  0xa1   :  { %1133 = vmatpush.msrb.mxu3 %v3924_v35  ;;  %1092 = vmatpush.msrb.mxu2 %v3973_v34 }
  0xa2   :  { %1261 = vmatpush.msra.mxu1 %v4017_v19  ;;  %1174 = vmatpush.msra.mxu0 %v3939_v7  ;;  %v121_v19 = vadd.f32 %v4247_v30, %v120_v5 }
  0xa3   :  { %1135 = vmatpush.msrb.mxu3 %v3939_v7  ;;  %v176_v31 = vpop.f32.mrf.mxu2  ;;  %1096 = vmatpush.msrb.mxu2 %v3996_v2 }
  0xa4   :  { %1267 = vmatpush.msra.mxu1 %v4032_v8  ;;  %v177_v42 = vadd.f32 %v4247_v30, %v176_v31  ;;  %1176 = vmatpush.msra.mxu0 %v3959_v50  ;;  %v230_v60 = vpop.f32.mrf.mxu3  ;;  %v203_v31 = vadd.f32 %v202_v38, %v121_v19 }
  0xa5   :  { %1137 = vmatpush.msrb.mxu3 %v3959_v50  ;;  %v136_v41 = vpop.f32.mrf.mxu0  ;;  %1100 = vmatpush.msrb.mxu2 %v4022_v11 }
  0xa6   :  { %1273 = vmatpush.msra.mxu1 %v4040_v39  ;;  %v4278_v54 = vadd.f32 %v230_v60, %v177_v42  ;;  %1178 = vmatpush.msra.mxu0 %v3975_v58  ;;  %v210_v8 = vpop.f32.mrf.mxu1 }
  0xa7   :  { %1139 = vmatpush.msrb.mxu3 %v3975_v58  ;;  %1104 = vmatpush.msrb.mxu2 %v4026_v20 }
  0xa8   :  { %1279 = vmatpush.msra.mxu1 %v4050_v49  ;;  %1180 = vmatpush.msra.mxu0 %v3998_v29 }
  0xa9   :  { %1141 = vmatpush.msrb.mxu3 %v3998_v29  ;;  %v137_v29 = vadd.f32 %v4247_v30, %v136_v41 }
  0xaa   :  { %1285 = vmatpush.msra.mxu1 %v4057_v4 }
  0xab   :  { %v254_v39 = vpop.f32.mrf.mxu2  ;;  %v211_v4 = vadd.f32 %v210_v8, %v137_v29 }
  0xac   :  { %v255_v5 = vadd.f32 %v254_v39, %v203_v31 }
  0xad   :  { %v144_v60 = vpop.f32.mrf.mxu0  ;;  %v313_v42 = vpop.f32.mrf.mxu3 }
  0xae   :  { %v145_v11 = vadd.f32 %v4247_v30, %v144_v60  ;;  %v314_v26 = vadd.f32 %v313_v42, %v255_v5 }
  0xaf   :  { %v214_v2 = vpop.f32.mrf.mxu1 }
  0xb0   :  { %v215_v20 = vadd.f32 %v214_v2, %v145_v11 }
  0xb3   :  { %v259_v49 = vpop.f32.mrf.mxu2 }
  0xb4   :  { %v260_v59 = vadd.f32 %v259_v49, %v207_v25 }
  0xb5   :  { %v152_v34 = vpop.f32.mrf.mxu0  ;;  %v319_v63 = vpop.f32.mrf.mxu3 }
  0xb6   :  { %v153_v19 = vadd.f32 %v4247_v30, %v152_v34  ;;  %v320_v38 = vadd.f32 %v319_v63, %v260_v59 }
  0xb7   :  { %v218_v39 = vpop.f32.mrf.mxu1 }
  0xb8   :  { %v219_v31 = vadd.f32 %v218_v39, %v153_v19 }
  0xbb   :  { %v264_v23 = vpop.f32.mrf.mxu2 }
  0xbc   :  { %v265_v62 = vadd.f32 %v264_v23, %v211_v4 }
  0xbd   :  { %v160_v58 = vpop.f32.mrf.mxu0  ;;  %v325_v60 = vpop.f32.mrf.mxu3 }
  0xbe   :  { %v161_v5 = vadd.f32 %v4247_v30, %v160_v58  ;;  %v326_v2 = vadd.f32 %v325_v60, %v265_v62 }
  0xbf   :  { %v222_v11 = vpop.f32.mrf.mxu1 }
  0xc0   :  { %v223_v48 = vadd.f32 %v222_v11, %v161_v5 }
  0xc3   :  { %v269_v49 = vpop.f32.mrf.mxu2 }
  0xc4   :  { %v270_v25 = vadd.f32 %v269_v49, %v215_v20 }
  0xc5   :  { %v331_v6 = vpop.f32.mrf.mxu3  ;;  %v379_v42 = vpop.f32.mrf.mxu0 }
  0xc6   :  { %v332_v41 = vadd.f32 %v331_v6, %v270_v25  ;;  %v380_v47 = vadd.f32 %v379_v42, %v314_v26 }
  0xc7   :  { %v429_v34 = vpop.f32.mrf.mxu1 }
  0xc8   :  { %v430_v63 = vadd.f32 %v429_v34, %v380_v47 }
  0xcb   :  { %v274_v59 = vpop.f32.mrf.mxu2 }
  0xcc   :  { %v275_v19 = vadd.f32 %v274_v59, %v219_v31 }
  0xcd   :  { %v337_v29 = vpop.f32.mrf.mxu3  ;;  %v383_v8 = vpop.f32.mrf.mxu0 }
  0xce   :  { %v338_v23 = vadd.f32 %v337_v29, %v275_v19  ;;  %v384_v4 = vadd.f32 %v383_v8, %v320_v38 }
  0xcf   :  { %v433_v39 = vpop.f32.mrf.mxu1 }
  0xd0   :  { %v4292_v16 = vadd.f32 %v433_v39, %v384_v4 }
  0xd3   :  { %v279_v58 = vpop.f32.mrf.mxu2 }
  0xd4   :  { %v280_v30 = vadd.f32 %v279_v58, %v223_v48 }
  0xd5   :  { %v343_v62 = vpop.f32.mrf.mxu3  ;;  %v387_v60 = vpop.f32.mrf.mxu0 }
  0xd6   :  { %v344_v20 = vadd.f32 %v343_v62, %v280_v30  ;;  %v388_v5 = vadd.f32 %v387_v60, %v326_v2 }
  0xd7   :  { %v437_v11 = vpop.f32.mrf.mxu1 }
  0xd8   :  { %v4294_v49 = vadd.f32 %v437_v11, %v388_v5 }
  0xda   :  { %5239 = vst [vmem:[#allocation10_spill] sm:$0xff] %v4294_v49  ;;  %v5273_v49 = vld [vmem:[#allocation47_spill] sm:$0xff] }
  0xdb   :  { %v284_v26 = vpop.f32.mrf.mxu2 }
  0xdc   :  { %v285_v47 = vadd.f32 %v284_v26, %v4258_v18 }
  0xdd   :  { %v349_v31 = vpop.f32.mrf.mxu3  ;;  %v391_v25 = vpop.f32.mrf.mxu0 }
  0xde   :  { %v350_v6 = vadd.f32 %v349_v31, %v285_v47  ;;  %v392_v42 = vadd.f32 %v391_v25, %v332_v41 }
  0xdf   :  { %v441_v38 = vpop.f32.mrf.mxu1 }
  0xe0   :  { %v4297_v34 = vadd.f32 %v441_v38, %v392_v42 }
  0xe2   :  { %5240 = vst [vmem:[#allocation8_spill] sm:$0xff] %v4297_v34  ;;  %v5272_v34 = vld [vmem:[#allocation46_spill] sm:$0xff] }
  0xe3   :  { %v289_v59 = vpop.f32.mrf.mxu2 }
  0xe4   :  { %v290_v48 = vadd.f32 %v289_v59, %v4278_v54 }
  0xe5   :  { %v355_v19 = vpop.f32.mrf.mxu3  ;;  %v395_v29 = vpop.f32.mrf.mxu0 }
  0xe6   :  { %v356_v8 = vadd.f32 %v355_v19, %v290_v48  ;;  %v396_v2 = vadd.f32 %v395_v29, %v338_v23 }
  0xe7   :  { %v445_v4 = vpop.f32.mrf.mxu1 }
  0xe8   :  { %v4300_v39 = vadd.f32 %v445_v4, %v396_v2 }
  0xea   :  { %5241 = vst [vmem:[#allocation9_spill] sm:$0xff] %v4300_v39  ;;  %v5271_v39 = vld [vmem:[#allocation45_spill] sm:$0xff] }
  0xeb   :  { %v509_v60 = vpop.f32.mrf.mxu2 }
  0xed   :  { %v399_v58 = vpop.f32.mrf.mxu0  ;;  %v609_v11 = vpop.f32.mrf.mxu3 }
  0xee   :  { %v400_v30 = vadd.f32 %v399_v58, %v344_v20  ;;  %v610_v54 = vadd.f32 %v609_v11, %v509_v60  ;;  %v5247_v11 = vld [vmem:[#allocation34_spill] sm:$0xff] }
  0xef   :  { %v449_v18 = vpop.f32.mrf.mxu1 }
  0xf0   :  { %v4302_v62 = vadd.f32 %v449_v18, %v400_v30 }
  0xf2   :  { %5242 = vst [vmem:[#allocation11_spill] sm:$0xff] %v4302_v62  ;;  %v5270_v62 = vld [vmem:[#allocation42_spill] sm:$0xff] }
  0xf3   :  { %v661_v31 = vpop.f32.mrf.mxu2 }
  0xf4   :  { %v662_v38 = vadd.f32 %v661_v31, %v610_v54  ;;  %v5249_v54 = vld [vmem:[#allocation27_spill] sm:$0xff]  ;;  %v5250_v31 = vld [vmem:[#allocation38_spill] sm:$0xff] }
  0xf5   :  { %v403_v41 = vpop.f32.mrf.mxu0  ;;  %v697_v48 = vpop.f32.mrf.mxu3 }
  0xf6   :  { %v404_v5 = vadd.f32 %v403_v41, %v350_v6  ;;  %v698_v20 = vadd.f32 %v697_v48, %v662_v38  ;;  %v5245_v41 = vld [vmem:[#allocation29_spill] sm:$0xff]  ;;  %v5255_v48 = vld [vmem:[#allocation35_spill] sm:$0xff] }
  0xf7   :  { %v453_v26 = vpop.f32.mrf.mxu1  ;;  %v5254_v38 = vld [vmem:[#allocation37_spill] sm:$0xff] }
  0xf8   :  { %v4304_v47 = vadd.f32 %v453_v26, %v404_v5  ;;  %v5246_v5 = vld [vmem:[#allocation26_spill] sm:$0xff] }
  0xf9   :  { %v5248_v26 = vld [vmem:[#allocation30_spill] sm:$0xff] }
  0xfa   :  { %5243 = vst [vmem:[#allocation12_spill] sm:$0xff] %v4304_v47  ;;  %v5269_v47 = vld [vmem:[#allocation39_spill] sm:$0xff] }
  0xfd   :  { %v407_v25 = vpop.f32.mrf.mxu0 }
  0xfe   :  { %v408_v42 = vadd.f32 %v407_v25, %v356_v8  ;;  %v5251_v25 = vld [vmem:[#allocation33_spill] sm:$0xff] }
  0xff   :  { %v457_v23 = vpop.f32.mrf.mxu1 }
 0x100   :  { %v4306_v59 = vadd.f32 %v457_v23, %v408_v42  ;;  %v5252_v42 = vld [vmem:[#allocation31_spill] sm:$0xff]  ;;  %v5253_v23 = vld [vmem:[#allocation14_spill] sm:$0xff] }
 0x102   :  { %5244 = vst [vmem:[#allocation13_spill] sm:$0xff] %v4306_v59  ;;  %v5268_v59 = vld [vmem:[#allocation36_spill] sm:$0xff] }
 0x105   :  { %v765_v19 = vpop.f32.mrf.mxu0 }
 0x106   :  { %v766_v29 = vadd.f32 %v765_v19, %v698_v20  ;;  %v5256_v20 = vld [vmem:[#allocation17_spill] sm:$0xff]  ;;  %v5257_v19 = vld [vmem:[#allocation43_spill] sm:$0xff] }
 0x107   :  { %v801_v2 = vpop.f32.mrf.mxu1 }
 0x108   :  { %v802_v4 = vadd.f32 %v801_v2, %v766_v29  ;;  %v5258_v29 = vld [vmem:[#allocation40_spill] sm:$0xff]  ;;  %v5259_v2 = vld [vmem:[#allocation18_spill] sm:$0xff] }
 0x10a   :  { %v804_v58 = vadd.f32 %v802_v4, %v430_v63  ;;  %v5260_v4 = vld [vmem:[#allocation44_spill] sm:$0xff] }
 0x10c   :  { %3584 = vtanh.f32 %v804_v58  ;;  %v5261_v58 = vld [vmem:[#allocation41_spill] sm:$0xff] }
 0x112   :  { %v3585_v6 = vpop.eup %3584 }
 0x113   :  { %v838_v30 = vand.u32 4294901760, %v3585_v6 }
 0x115   :  { %944 = vmatmul.f32.vlgmr.msra.gmra.mxu3 %v838_v30  ;;  %v839_v18 = vsub.f32 %v3585_v6, %v838_v30  ;;  %v5262_v6 = vld [vmem:[#allocation20_spill] sm:$0xff] }
 0x116   :  { %1346 = vmatpush.msra.mxu3 %v3746_v28 }
 0x117   :  { %998 = vmatmul.f32.vlgmr.msrb.gmra.mxu0 %v839_v18  ;;  %v840_v8 = vand.u32 4294901760, %v839_v18 }
 0x118   :  { %1348 = vmatpush.msra.mxu3 %v3771_v45  ;;  %1387 = vmatpush.msrb.mxu0 %v5231_v40 }
 0x119   :  { %1037 = vmatmul.f32.vlgmr.msrb.gmra.mxu1 %v840_v8  ;;  %v841_v60 = vsub.f32 %v839_v18, %v840_v8  ;;  %v5264_v18 = vld [vmem:[#allocation24_spill] sm:$0xff]  ;;  %v5265_v8 = vld [vmem:[#allocation25_spill] sm:$0xff] }
 0x11a   :  { %1350 = vmatpush.msra.mxu3 %v3773_v46  ;;  %1454 = vmatpush.msrb.mxu1 %v3746_v28 }
 0x11b   :  { %v842_v63 = vand.u32 4294901760, %v841_v60  ;;  %1391 = vmatpush.msrb.mxu0 %v5232_v3  ;;  %v5266_v60 = vld [vmem:[#allocation28_spill] sm:$0xff] }
 0x11c   :  { %1352 = vmatpush.msra.mxu3 %v3788_v52  ;;  %1456 = vmatpush.msrb.mxu1 %v3771_v45 }
 0x11d   :  { %843 = vmatmul.f32.vlgmr.msra.gmra.mxu2 %v842_v63  ;;  %1143 = vmatmul.f32.vlgmr.msrb.gmra.mxu3 %v838_v30  ;;  %v5267_v63 = vld [vmem:[#allocation32_spill] sm:$0xff] }
 0x11e   :  { %1293 = vmatpush.msra.mxu2 %v3769_v44  ;;  %1354 = vmatpush.msra.mxu3 %v3794_v56 }
 0x11f   :  { %1458 = vmatpush.msrb.mxu1 %v3773_v46  ;;  %1395 = vmatpush.msrb.mxu0 %v5233_v10 }
 0x120   :  { %1296 = vmatpush.msra.mxu2 %v3786_v51  ;;  %1356 = vmatpush.msra.mxu3 %v3810_v0 }
 0x121   :  { %1460 = vmatpush.msrb.mxu1 %v3788_v52  ;;  %1399 = vmatpush.msrb.mxu0 %v5234_v13 }
 0x122   :  { %1299 = vmatpush.msra.mxu2 %v3792_v55  ;;  %1358 = vmatpush.msra.mxu3 %v3833_v9 }
 0x123   :  { %1462 = vmatpush.msrb.mxu1 %v3794_v56  ;;  %1403 = vmatpush.msrb.mxu0 %v5235_v17 }
 0x124   :  { %1302 = vmatpush.msra.mxu2 %v3803_v61  ;;  %1360 = vmatpush.msra.mxu3 %v3846_v24 }
 0x125   :  { %1106 = vmatmul.f32.vlgmr.msrb.gmra.mxu2 %v838_v30  ;;  %1464 = vmatpush.msrb.mxu1 %v3810_v0  ;;  %v5263_v30 = vld [vmem:[#allocation23_spill] sm:$0xff] }
 0x126   :  { %1305 = vmatpush.msra.mxu2 %v3813_v1  ;;  %1362 = vmatpush.msra.mxu3 %v3863_v36 }
 0x127   :  { %1466 = vmatpush.msrb.mxu1 %v3833_v9  ;;  %1407 = vmatpush.msrb.mxu0 %v5236_v27 }
 0x128   :  { %1308 = vmatpush.msra.mxu2 %v3836_v12  ;;  %1364 = vmatpush.msra.mxu3 %v3882_v53 }
 0x129   :  { %1468 = vmatpush.msrb.mxu1 %v3846_v24  ;;  %1411 = vmatpush.msrb.mxu0 %v5237_v32 }
 0x12a   :  { %1311 = vmatpush.msra.mxu2 %v3858_v33  ;;  %1366 = vmatpush.msra.mxu3 %v3904_v15 }
 0x12b   :  { %1470 = vmatpush.msrb.mxu1 %v3863_v36  ;;  %1415 = vmatpush.msrb.mxu0 %v5238_v22 }
 0x12c   :  { %1314 = vmatpush.msra.mxu2 %v3866_v37  ;;  %1368 = vmatpush.msra.mxu3 %v3924_v35 }
 0x12d   :  { %1472 = vmatpush.msrb.mxu1 %v3882_v53  ;;  %1419 = vmatpush.msrb.mxu0 %v3902_v14 }
 0x12e   :  { %1317 = vmatpush.msra.mxu2 %v3885_v57  ;;  %1370 = vmatpush.msra.mxu3 %v3939_v7 }
 0x12f   :  { %1474 = vmatpush.msrb.mxu1 %v3904_v15  ;;  %1423 = vmatpush.msrb.mxu0 %v3922_v43 }
 0x130   :  { %1320 = vmatpush.msra.mxu2 %v3907_v21  ;;  %1372 = vmatpush.msra.mxu3 %v3959_v50 }
 0x131   :  { %1476 = vmatpush.msrb.mxu1 %v3924_v35  ;;  %1427 = vmatpush.msrb.mxu0 %v5245_v41 }
 0x132   :  { %1323 = vmatpush.msra.mxu2 %v5246_v5  ;;  %1374 = vmatpush.msra.mxu3 %v5247_v11 }
 0x133   :  { %1478 = vmatpush.msrb.mxu1 %v3939_v7  ;;  %1431 = vmatpush.msrb.mxu0 %v5248_v26 }
 0x134   :  { %1326 = vmatpush.msra.mxu2 %v5249_v54  ;;  %1376 = vmatpush.msra.mxu3 %v5250_v31 }
 0x135   :  { %1480 = vmatpush.msrb.mxu1 %v3959_v50  ;;  %1435 = vmatpush.msrb.mxu0 %v5251_v25 }
 0x136   :  { %1329 = vmatpush.msra.mxu2 %v5252_v42  ;;  %1538 = vmatpush.msrb.mxu3 %v5253_v23 }
 0x137   :  { %1482 = vmatpush.msrb.mxu1 %v5247_v11  ;;  %1439 = vmatpush.msrb.mxu0 %v5254_v38 }
 0x138   :  { %1332 = vmatpush.msra.mxu2 %v5255_v48  ;;  %1544 = vmatpush.msrb.mxu3 %v5256_v20 }
 0x139   :  { %1484 = vmatpush.msrb.mxu1 %v5250_v31  ;;  %1443 = vmatpush.msrb.mxu0 %v5257_v19 }
 0x13a   :  { %1335 = vmatpush.msra.mxu2 %v5258_v29  ;;  %1550 = vmatpush.msrb.mxu3 %v5259_v2 }
 0x13b   :  { %1447 = vmatpush.msrb.mxu0 %v5260_v4 }
 0x13c   :  { %1338 = vmatpush.msra.mxu2 %v5261_v58  ;;  %1556 = vmatpush.msrb.mxu3 %v5262_v6 }
 0x13e   :  { %1493 = vmatpush.msrb.mxu2 %v3746_v28  ;;  %1562 = vmatpush.msrb.mxu3 %v5263_v30 }
 0x140   :  { %1495 = vmatpush.msrb.mxu2 %v3771_v45  ;;  %1568 = vmatpush.msrb.mxu3 %v5264_v18 }
 0x142   :  { %1497 = vmatpush.msrb.mxu2 %v3773_v46  ;;  %1574 = vmatpush.msrb.mxu3 %v5265_v8 }
 0x144   :  { %1499 = vmatpush.msrb.mxu2 %v3788_v52  ;;  %1580 = vmatpush.msrb.mxu3 %v5266_v60 }
 0x146   :  { %1501 = vmatpush.msrb.mxu2 %v3794_v56  ;;  %1586 = vmatpush.msrb.mxu3 %v5267_v63 }
 0x148   :  { %1503 = vmatpush.msrb.mxu2 %v3810_v0  ;;  %1592 = vmatpush.msrb.mxu3 %v5268_v59  ;;  %v5274_v59 = vld [vmem:[#allocation48_spill] sm:$0xff] }
 0x14a   :  { %1505 = vmatpush.msrb.mxu2 %v3833_v9  ;;  %1598 = vmatpush.msrb.mxu3 %v5269_v47 }
 0x14c   :  { %1507 = vmatpush.msrb.mxu2 %v3846_v24  ;;  %1604 = vmatpush.msrb.mxu3 %v5270_v62 }
 0x14e   :  { %1509 = vmatpush.msrb.mxu2 %v3863_v36  ;;  %1610 = vmatpush.msrb.mxu3 %v5271_v39 }
 0x150   :  { %1511 = vmatpush.msrb.mxu2 %v3882_v53  ;;  %1616 = vmatpush.msrb.mxu3 %v5272_v34 }
 0x152   :  { %1513 = vmatpush.msrb.mxu2 %v3904_v15  ;;  %1622 = vmatpush.msrb.mxu3 %v5273_v49 }
 0x154   :  { %1515 = vmatpush.msrb.mxu2 %v3924_v35  ;;  %1628 = vmatpush.msrb.mxu3 %v5274_v59 }
 0x156   :  { %1517 = vmatpush.msrb.mxu2 %v3939_v7 }
 0x158   :  { %1519 = vmatpush.msrb.mxu2 %v3959_v50 }
 0x15a   :  { %1521 = vmatpush.msrb.mxu2 %v5247_v11 }
 0x15c   :  { %1523 = vmatpush.msrb.mxu2 %v5250_v31 }
 0x194   :  { %v999_v34 = vpop.f32.mrf.mxu0 }
 0x196   :  { %v1038_v60 = vpop.f32.mrf.mxu1 }
 0x198   :  { %v945_v39 = vpop.f32.mrf.mxu3 }
 0x1a0   :  { %v844_v62 = vpop.f32.mrf.mxu2  ;;  %v1144_v30 = vpop.f32.mrf.mxu3 }
 0x1a1   :  { %v946_v47 = vadd.f32 %v945_v39, %v844_v62  ;;  %v5276_v39 = vld [vmem:[#allocation18_spill] sm:$0xff]  ;;  %v5277_v62 = vld [vmem:[#allocation44_spill] sm:$0xff] }
 0x1a3   :  { %v1000_v63 = vadd.f32 %v999_v34, %v946_v47  ;;  %v5278_v47 = vld [vmem:[#allocation41_spill] sm:$0xff] }
 0x1a5   :  { %v1039_v8 = vadd.f32 %v1038_v60, %v1000_v63  ;;  %v5288_v60 = vld [vmem:[#allocation45_spill] sm:$0xff]  ;;  %v5289_v63 = vld [vmem:[#allocation46_spill] sm:$0xff] }
 0x1a8   :  { %v1107_v49 = vpop.f32.mrf.mxu2 }
 0x1a9   :  { %v1108_v18 = vadd.f32 %v1107_v49, %v1039_v8  ;;  %v5275_v49 = vld [vmem:[#allocation40_spill] sm:$0xff]  ;;  %v5287_v8 = vld [vmem:[#allocation42_spill] sm:$0xff] }
 0x1ab   :  { %v1145_v6 = vadd.f32 %v1144_v30, %v1108_v18  ;;  %v5285_v30 = vld [vmem:[#allocation36_spill] sm:$0xff]  ;;  %v5286_v18 = vld [vmem:[#allocation39_spill] sm:$0xff] }
 0x1ad   :  { %v1147_v59 = vadd.f32 %v1145_v6, %v4292_v16  ;;  %v5284_v6 = vld [vmem:[#allocation32_spill] sm:$0xff] }
 0x1af   :  { %3586 = vtanh.f32 %v1147_v59  ;;  %v5279_v59 = vld [vmem:[#allocation20_spill] sm:$0xff] }
 0x1b5   :  { %v3587_v58 = vpop.eup %3586 }
 0x1b6   :  { %v1181_v4 = vand.u32 4294901760, %v3587_v58 }
 0x1b8   :  { %1287 = vmatmul.f32.vlgmr.msra.gmra.mxu1 %v1181_v4  ;;  %v1182_v2 = vsub.f32 %v3587_v58, %v1181_v4  ;;  %v5283_v58 = vld [vmem:[#allocation28_spill] sm:$0xff] }
 0x1b9   :  { %1689 = vmatpush.msra.mxu1 %v3746_v28 }
 0x1ba   :  { %1341 = vmatmul.f32.vlgmr.msra.gmra.mxu2 %v1182_v2  ;;  %v1183_v29 = vand.u32 4294901760, %v1182_v2 }
 0x1bb   :  { %1691 = vmatpush.msra.mxu1 %v3771_v45  ;;  %1730 = vmatpush.msra.mxu2 %v5231_v40 }
 0x1bc   :  { %1380 = vmatmul.f32.vlgmr.msra.gmra.mxu3 %v1183_v29  ;;  %v1184_v34 = vsub.f32 %v1182_v2, %v1183_v29  ;;  %v5280_v29 = vld [vmem:[#allocation23_spill] sm:$0xff]  ;;  %v5281_v2 = vld [vmem:[#allocation24_spill] sm:$0xff] }
 0x1bd   :  { %1693 = vmatpush.msra.mxu1 %v3773_v46  ;;  %1797 = vmatpush.msra.mxu3 %v3746_v28 }
 0x1be   :  { %v1185_v16 = vand.u32 4294901760, %v1184_v34  ;;  %1734 = vmatpush.msra.mxu2 %v5232_v3  ;;  %v5290_v34 = vld [vmem:[#allocation47_spill] sm:$0xff] }
 0x1bf   :  { %1695 = vmatpush.msra.mxu1 %v3788_v52  ;;  %1799 = vmatpush.msra.mxu3 %v3771_v45 }
 0x1c0   :  { %1186 = vmatmul.f32.vlgmr.msra.gmra.mxu0 %v1185_v16  ;;  %1486 = vmatmul.f32.vlgmr.msrb.gmra.mxu1 %v1181_v4  ;;  %v5291_v16 = vld [vmem:[#allocation48_spill] sm:$0xff] }
 0x1c1   :  { %1636 = vmatpush.msra.mxu0 %v3769_v44  ;;  %1697 = vmatpush.msra.mxu1 %v3794_v56 }
 0x1c2   :  { %1801 = vmatpush.msra.mxu3 %v3773_v46  ;;  %1738 = vmatpush.msra.mxu2 %v5233_v10 }
 0x1c3   :  { %1639 = vmatpush.msra.mxu0 %v3786_v51  ;;  %1699 = vmatpush.msra.mxu1 %v3810_v0 }
 0x1c4   :  { %1803 = vmatpush.msra.mxu3 %v3788_v52  ;;  %1742 = vmatpush.msra.mxu2 %v5234_v13 }
 0x1c5   :  { %1642 = vmatpush.msra.mxu0 %v3792_v55  ;;  %1701 = vmatpush.msra.mxu1 %v3833_v9 }
 0x1c6   :  { %1805 = vmatpush.msra.mxu3 %v3794_v56  ;;  %1746 = vmatpush.msra.mxu2 %v5235_v17 }
 0x1c7   :  { %1645 = vmatpush.msra.mxu0 %v3803_v61  ;;  %1703 = vmatpush.msra.mxu1 %v3846_v24 }
 0x1c8   :  { %1449 = vmatmul.f32.vlgmr.msrb.gmra.mxu0 %v1181_v4  ;;  %1807 = vmatpush.msra.mxu3 %v3810_v0  ;;  %v5282_v4 = vld [vmem:[#allocation25_spill] sm:$0xff] }
 0x1c9   :  { %1648 = vmatpush.msra.mxu0 %v3813_v1  ;;  %1705 = vmatpush.msra.mxu1 %v3863_v36 }
 0x1ca   :  { %1809 = vmatpush.msra.mxu3 %v3833_v9  ;;  %1750 = vmatpush.msra.mxu2 %v5236_v27 }
 0x1cb   :  { %1651 = vmatpush.msra.mxu0 %v3836_v12  ;;  %1707 = vmatpush.msra.mxu1 %v3882_v53 }
 0x1cc   :  { %1811 = vmatpush.msra.mxu3 %v3846_v24  ;;  %1754 = vmatpush.msra.mxu2 %v5237_v32 }
 0x1cd   :  { %1654 = vmatpush.msra.mxu0 %v3858_v33  ;;  %1709 = vmatpush.msra.mxu1 %v3904_v15 }
 0x1ce   :  { %1813 = vmatpush.msra.mxu3 %v3863_v36  ;;  %1758 = vmatpush.msra.mxu2 %v5238_v22 }
 0x1cf   :  { %1657 = vmatpush.msra.mxu0 %v3866_v37  ;;  %1711 = vmatpush.msra.mxu1 %v3924_v35 }
 0x1d0   :  { %1815 = vmatpush.msra.mxu3 %v3882_v53  ;;  %1762 = vmatpush.msra.mxu2 %v3902_v14 }
 0x1d1   :  { %1660 = vmatpush.msra.mxu0 %v3885_v57  ;;  %1713 = vmatpush.msra.mxu1 %v3939_v7 }
 0x1d2   :  { %1817 = vmatpush.msra.mxu3 %v3904_v15  ;;  %1766 = vmatpush.msra.mxu2 %v3922_v43 }
 0x1d3   :  { %1663 = vmatpush.msra.mxu0 %v3907_v21  ;;  %1715 = vmatpush.msra.mxu1 %v3959_v50 }
 0x1d4   :  { %1819 = vmatpush.msra.mxu3 %v3924_v35  ;;  %1770 = vmatpush.msra.mxu2 %v5245_v41 }
 0x1d5   :  { %1666 = vmatpush.msra.mxu0 %v5246_v5  ;;  %1717 = vmatpush.msra.mxu1 %v5247_v11 }
 0x1d6   :  { %1821 = vmatpush.msra.mxu3 %v3939_v7  ;;  %1774 = vmatpush.msra.mxu2 %v5248_v26 }
 0x1d7   :  { %1669 = vmatpush.msra.mxu0 %v5249_v54  ;;  %1719 = vmatpush.msra.mxu1 %v5250_v31 }
 0x1d8   :  { %1823 = vmatpush.msra.mxu3 %v3959_v50  ;;  %1778 = vmatpush.msra.mxu2 %v5251_v25 }
 0x1d9   :  { %1672 = vmatpush.msra.mxu0 %v5252_v42  ;;  %1881 = vmatpush.msrb.mxu1 %v5253_v23 }
 0x1da   :  { %1825 = vmatpush.msra.mxu3 %v5247_v11  ;;  %1782 = vmatpush.msra.mxu2 %v5254_v38 }
 0x1db   :  { %1675 = vmatpush.msra.mxu0 %v5255_v48  ;;  %1887 = vmatpush.msrb.mxu1 %v5256_v20 }
 0x1dc   :  { %1827 = vmatpush.msra.mxu3 %v5250_v31  ;;  %1786 = vmatpush.msra.mxu2 %v5257_v19 }
 0x1dd   :  { %1678 = vmatpush.msra.mxu0 %v5275_v49  ;;  %1893 = vmatpush.msrb.mxu1 %v5276_v39 }
 0x1de   :  { %1790 = vmatpush.msra.mxu2 %v5277_v62 }
 0x1df   :  { %1681 = vmatpush.msra.mxu0 %v5278_v47  ;;  %1899 = vmatpush.msrb.mxu1 %v5279_v59 }
 0x1e1   :  { %1836 = vmatpush.msrb.mxu0 %v3746_v28  ;;  %1905 = vmatpush.msrb.mxu1 %v5280_v29 }
 0x1e3   :  { %1838 = vmatpush.msrb.mxu0 %v3771_v45  ;;  %1911 = vmatpush.msrb.mxu1 %v5281_v2 }
 0x1e5   :  { %1840 = vmatpush.msrb.mxu0 %v3773_v46  ;;  %1917 = vmatpush.msrb.mxu1 %v5282_v4 }
 0x1e7   :  { %1842 = vmatpush.msrb.mxu0 %v3788_v52  ;;  %1923 = vmatpush.msrb.mxu1 %v5283_v58 }
 0x1e9   :  { %1844 = vmatpush.msrb.mxu0 %v3794_v56  ;;  %1929 = vmatpush.msrb.mxu1 %v5284_v6 }
 0x1eb   :  { %1846 = vmatpush.msrb.mxu0 %v3810_v0  ;;  %1935 = vmatpush.msrb.mxu1 %v5285_v30 }
 0x1ed   :  { %1848 = vmatpush.msrb.mxu0 %v3833_v9  ;;  %1941 = vmatpush.msrb.mxu1 %v5286_v18 }
 0x1ef   :  { %1850 = vmatpush.msrb.mxu0 %v3846_v24  ;;  %1947 = vmatpush.msrb.mxu1 %v5287_v8 }
 0x1f1   :  { %1852 = vmatpush.msrb.mxu0 %v3863_v36  ;;  %1953 = vmatpush.msrb.mxu1 %v5288_v60 }
 0x1f3   :  { %1854 = vmatpush.msrb.mxu0 %v3882_v53  ;;  %1959 = vmatpush.msrb.mxu1 %v5289_v63 }
 0x1f5   :  { %1856 = vmatpush.msrb.mxu0 %v3904_v15  ;;  %1965 = vmatpush.msrb.mxu1 %v5290_v34 }
 0x1f7   :  { %1858 = vmatpush.msrb.mxu0 %v3924_v35  ;;  %1971 = vmatpush.msrb.mxu1 %v5291_v16  ;;  %v5292_v16 = vld [vmem:[#allocation10_spill] sm:$0xff] }
 0x1f9   :  { %1860 = vmatpush.msrb.mxu0 %v3939_v7 }
 0x1fb   :  { %1862 = vmatpush.msrb.mxu0 %v3959_v50 }
 0x1fd   :  { %1864 = vmatpush.msrb.mxu0 %v5247_v11 }
 0x1ff   :  { %1866 = vmatpush.msrb.mxu0 %v5250_v31 }
 0x235   :  { %v1288_v60 = vpop.f32.mrf.mxu1 }
 0x23d   :  { %v1187_v8 = vpop.f32.mrf.mxu0  ;;  %v1342_v63 = vpop.f32.mrf.mxu2 }
 0x23e   :  { %v1289_v18 = vadd.f32 %v1288_v60, %v1187_v8  ;;  %v1487_v2 = vpop.f32.mrf.mxu1  ;;  %v5303_v8 = vld [vmem:[#allocation36_spill] sm:$0xff]  ;;  %v5304_v60 = vld [vmem:[#allocation39_spill] sm:$0xff] }
 0x23f   :  { %v1381_v6 = vpop.f32.mrf.mxu3 }
 0x240   :  { %v1343_v30 = vadd.f32 %v1342_v63, %v1289_v18  ;;  %v5302_v18 = vld [vmem:[#allocation32_spill] sm:$0xff]  ;;  %v5305_v63 = vld [vmem:[#allocation42_spill] sm:$0xff] }
 0x242   :  { %v1382_v58 = vadd.f32 %v1381_v6, %v1343_v30  ;;  %v5301_v30 = vld [vmem:[#allocation28_spill] sm:$0xff] }
 0x245   :  { %v1450_v34 = vpop.f32.mrf.mxu0 }
 0x246   :  { %v1451_v4 = vadd.f32 %v1450_v34, %v1382_v58  ;;  %v5300_v58 = vld [vmem:[#allocation25_spill] sm:$0xff] }
 0x247   :  { %v5306_v34 = vld [vmem:[#allocation45_spill] sm:$0xff] }
 0x248   :  { %v1488_v29 = vadd.f32 %v1487_v2, %v1451_v4  ;;  %v5298_v2 = vld [vmem:[#allocation23_spill] sm:$0xff]  ;;  %v5299_v4 = vld [vmem:[#allocation24_spill] sm:$0xff] }
 0x24a   :  { %v1490_v59 = vadd.f32 %v1488_v29, %v5292_v16  ;;  %v5307_v16 = vld [vmem:[#allocation46_spill] sm:$0xff] }
 0x24c   :  { %3588 = vtanh.f32 %v1490_v59  ;;  %v5297_v59 = vld [vmem:[#allocation20_spill] sm:$0xff] }
 0x252   :  { %v3589_v47 = vpop.eup %3588 }
 0x253   :  { %v1524_v62 = vand.u32 4294901760, %v3589_v47 }
 0x255   :  { %1630 = vmatmul.f32.vlgmr.msrb.gmra.mxu3 %v1524_v62  ;;  %v1525_v39 = vsub.f32 %v3589_v47, %v1524_v62  ;;  %v5296_v47 = vld [vmem:[#allocation41_spill] sm:$0xff] }
 0x256   :  { %2032 = vmatpush.msrb.mxu3 %v3746_v28 }
 0x257   :  { %1684 = vmatmul.f32.vlgmr.msra.gmra.mxu0 %v1525_v39  ;;  %v1526_v49 = vand.u32 4294901760, %v1525_v39 }
 0x258   :  { %2034 = vmatpush.msrb.mxu3 %v3771_v45  ;;  %2073 = vmatpush.msra.mxu0 %v5231_v40 }
 0x259   :  { %1723 = vmatmul.f32.vlgmr.msra.gmra.mxu1 %v1526_v49  ;;  %v1527_v6 = vsub.f32 %v1525_v39, %v1526_v49  ;;  %v5293_v49 = vld [vmem:[#allocation40_spill] sm:$0xff]  ;;  %v5294_v39 = vld [vmem:[#allocation18_spill] sm:$0xff] }
 0x25a   :  { %2036 = vmatpush.msrb.mxu3 %v3773_v46  ;;  %2140 = vmatpush.msra.mxu1 %v3746_v28 }
 0x25b   :  { %v1528_v29 = vand.u32 4294901760, %v1527_v6  ;;  %2077 = vmatpush.msra.mxu0 %v5232_v3  ;;  %v5308_v6 = vld [vmem:[#allocation47_spill] sm:$0xff] }
 0x25c   :  { %2038 = vmatpush.msrb.mxu3 %v3788_v52  ;;  %2142 = vmatpush.msra.mxu1 %v3771_v45 }
 0x25d   :  { %1529 = vmatmul.f32.vlgmr.msrb.gmra.mxu2 %v1528_v29  ;;  %1829 = vmatmul.f32.vlgmr.msra.gmra.mxu3 %v1524_v62  ;;  %v5309_v29 = vld [vmem:[#allocation48_spill] sm:$0xff] }
 0x25e   :  { %1979 = vmatpush.msrb.mxu2 %v3769_v44  ;;  %2040 = vmatpush.msrb.mxu3 %v3794_v56 }
 0x25f   :  { %2144 = vmatpush.msra.mxu1 %v3773_v46  ;;  %2081 = vmatpush.msra.mxu0 %v5233_v10 }
 0x260   :  { %1982 = vmatpush.msrb.mxu2 %v3786_v51  ;;  %2042 = vmatpush.msrb.mxu3 %v3810_v0 }
 0x261   :  { %2146 = vmatpush.msra.mxu1 %v3788_v52  ;;  %2085 = vmatpush.msra.mxu0 %v5234_v13 }
 0x262   :  { %1985 = vmatpush.msrb.mxu2 %v3792_v55  ;;  %2044 = vmatpush.msrb.mxu3 %v3833_v9 }
 0x263   :  { %2148 = vmatpush.msra.mxu1 %v3794_v56  ;;  %2089 = vmatpush.msra.mxu0 %v5235_v17 }
 0x264   :  { %1988 = vmatpush.msrb.mxu2 %v3803_v61  ;;  %2046 = vmatpush.msrb.mxu3 %v3846_v24 }
 0x265   :  { %1792 = vmatmul.f32.vlgmr.msra.gmra.mxu2 %v1524_v62  ;;  %2150 = vmatpush.msra.mxu1 %v3810_v0  ;;  %v5295_v62 = vld [vmem:[#allocation44_spill] sm:$0xff] }
 0x266   :  { %1991 = vmatpush.msrb.mxu2 %v3813_v1  ;;  %2048 = vmatpush.msrb.mxu3 %v3863_v36 }
 0x267   :  { %2152 = vmatpush.msra.mxu1 %v3833_v9  ;;  %2093 = vmatpush.msra.mxu0 %v5236_v27 }
 0x268   :  { %1994 = vmatpush.msrb.mxu2 %v3836_v12  ;;  %2050 = vmatpush.msrb.mxu3 %v3882_v53 }
 0x269   :  { %2154 = vmatpush.msra.mxu1 %v3846_v24  ;;  %2097 = vmatpush.msra.mxu0 %v5237_v32 }
 0x26a   :  { %1997 = vmatpush.msrb.mxu2 %v3858_v33  ;;  %2052 = vmatpush.msrb.mxu3 %v3904_v15 }
 0x26b   :  { %2156 = vmatpush.msra.mxu1 %v3863_v36  ;;  %2101 = vmatpush.msra.mxu0 %v5238_v22 }
 0x26c   :  { %2000 = vmatpush.msrb.mxu2 %v3866_v37  ;;  %2054 = vmatpush.msrb.mxu3 %v3924_v35 }
 0x26d   :  { %2158 = vmatpush.msra.mxu1 %v3882_v53  ;;  %2105 = vmatpush.msra.mxu0 %v3902_v14 }
 0x26e   :  { %2003 = vmatpush.msrb.mxu2 %v3885_v57  ;;  %2056 = vmatpush.msrb.mxu3 %v3939_v7 }
 0x26f   :  { %2160 = vmatpush.msra.mxu1 %v3904_v15  ;;  %2109 = vmatpush.msra.mxu0 %v3922_v43 }
 0x270   :  { %2006 = vmatpush.msrb.mxu2 %v3907_v21  ;;  %2058 = vmatpush.msrb.mxu3 %v3959_v50 }
 0x271   :  { %2162 = vmatpush.msra.mxu1 %v3924_v35  ;;  %2113 = vmatpush.msra.mxu0 %v5245_v41 }
 0x272   :  { %2009 = vmatpush.msrb.mxu2 %v5246_v5  ;;  %2060 = vmatpush.msrb.mxu3 %v5247_v11 }
 0x273   :  { %2164 = vmatpush.msra.mxu1 %v3939_v7  ;;  %2117 = vmatpush.msra.mxu0 %v5248_v26 }
 0x274   :  { %2012 = vmatpush.msrb.mxu2 %v5249_v54  ;;  %2062 = vmatpush.msrb.mxu3 %v5250_v31 }
 0x275   :  { %2166 = vmatpush.msra.mxu1 %v3959_v50  ;;  %2121 = vmatpush.msra.mxu0 %v5251_v25 }
 0x276   :  { %2015 = vmatpush.msrb.mxu2 %v5252_v42  ;;  %2224 = vmatpush.msra.mxu3 %v5253_v23 }
 0x277   :  { %2168 = vmatpush.msra.mxu1 %v5247_v11  ;;  %2125 = vmatpush.msra.mxu0 %v5254_v38 }
 0x278   :  { %2018 = vmatpush.msrb.mxu2 %v5255_v48  ;;  %2230 = vmatpush.msra.mxu3 %v5256_v20 }
 0x279   :  { %2170 = vmatpush.msra.mxu1 %v5250_v31  ;;  %2129 = vmatpush.msra.mxu0 %v5257_v19 }
 0x27a   :  { %2021 = vmatpush.msrb.mxu2 %v5293_v49  ;;  %2236 = vmatpush.msra.mxu3 %v5294_v39 }
 0x27b   :  { %2133 = vmatpush.msra.mxu0 %v5295_v62 }
 0x27c   :  { %2024 = vmatpush.msrb.mxu2 %v5296_v47  ;;  %2242 = vmatpush.msra.mxu3 %v5297_v59 }
 0x27e   :  { %2179 = vmatpush.msra.mxu2 %v3746_v28  ;;  %2248 = vmatpush.msra.mxu3 %v5298_v2 }
 0x280   :  { %2181 = vmatpush.msra.mxu2 %v3771_v45  ;;  %2254 = vmatpush.msra.mxu3 %v5299_v4 }
 0x282   :  { %2183 = vmatpush.msra.mxu2 %v3773_v46  ;;  %2260 = vmatpush.msra.mxu3 %v5300_v58 }
 0x284   :  { %2185 = vmatpush.msra.mxu2 %v3788_v52  ;;  %2266 = vmatpush.msra.mxu3 %v5301_v30 }
 0x286   :  { %2187 = vmatpush.msra.mxu2 %v3794_v56  ;;  %2272 = vmatpush.msra.mxu3 %v5302_v18 }
 0x288   :  { %2189 = vmatpush.msra.mxu2 %v3810_v0  ;;  %2278 = vmatpush.msra.mxu3 %v5303_v8 }
 0x28a   :  { %2191 = vmatpush.msra.mxu2 %v3833_v9  ;;  %2284 = vmatpush.msra.mxu3 %v5304_v60 }
 0x28c   :  { %2193 = vmatpush.msra.mxu2 %v3846_v24  ;;  %2290 = vmatpush.msra.mxu3 %v5305_v63 }
 0x28e   :  { %2195 = vmatpush.msra.mxu2 %v3863_v36  ;;  %2296 = vmatpush.msra.mxu3 %v5306_v34 }
 0x290   :  { %2197 = vmatpush.msra.mxu2 %v3882_v53  ;;  %2302 = vmatpush.msra.mxu3 %v5307_v16 }
 0x292   :  { %2199 = vmatpush.msra.mxu2 %v3904_v15  ;;  %2308 = vmatpush.msra.mxu3 %v5308_v6 }
 0x294   :  { %2201 = vmatpush.msra.mxu2 %v3924_v35  ;;  %2314 = vmatpush.msra.mxu3 %v5309_v29  ;;  %v5310_v29 = vld [vmem:[#allocation8_spill] sm:$0xff] }
 0x296   :  { %2203 = vmatpush.msra.mxu2 %v3939_v7 }
 0x298   :  { %2205 = vmatpush.msra.mxu2 %v3959_v50 }
 0x29a   :  { %2207 = vmatpush.msra.mxu2 %v5247_v11 }
 0x29c   :  { %2209 = vmatpush.msra.mxu2 %v5250_v31 }
 0x2d4   :  { %v1685_v16 = vpop.f32.mrf.mxu0 }
 0x2d6   :  { %v1724_v18 = vpop.f32.mrf.mxu1 }
 0x2d8   :  { %v1631_v34 = vpop.f32.mrf.mxu3 }
 0x2e0   :  { %v1530_v63 = vpop.f32.mrf.mxu2  ;;  %v1830_v4 = vpop.f32.mrf.mxu3 }
 0x2e1   :  { %v1632_v60 = vadd.f32 %v1631_v34, %v1530_v63  ;;  %v5321_v63 = vld [vmem:[#allocation36_spill] sm:$0xff]  ;;  %v5322_v34 = vld [vmem:[#allocation39_spill] sm:$0xff] }
 0x2e3   :  { %v1686_v8 = vadd.f32 %v1685_v16, %v1632_v60  ;;  %v5320_v60 = vld [vmem:[#allocation32_spill] sm:$0xff]  ;;  %v5323_v16 = vld [vmem:[#allocation42_spill] sm:$0xff] }
 0x2e5   :  { %v1725_v30 = vadd.f32 %v1724_v18, %v1686_v8  ;;  %v5319_v8 = vld [vmem:[#allocation28_spill] sm:$0xff] }
 0x2e8   :  { %v1793_v6 = vpop.f32.mrf.mxu2 }
 0x2e9   :  { %v1794_v58 = vadd.f32 %v1793_v6, %v1725_v30  ;;  %v5318_v30 = vld [vmem:[#allocation25_spill] sm:$0xff] }
 0x2ea   :  { %v5324_v6 = vld [vmem:[#allocation45_spill] sm:$0xff] }
 0x2eb   :  { %v1831_v2 = vadd.f32 %v1830_v4, %v1794_v58  ;;  %v5316_v4 = vld [vmem:[#allocation23_spill] sm:$0xff]  ;;  %v5317_v58 = vld [vmem:[#allocation24_spill] sm:$0xff] }
 0x2ed   :  { %v1833_v59 = vadd.f32 %v1831_v2, %v5310_v29  ;;  %v5325_v29 = vld [vmem:[#allocation46_spill] sm:$0xff] }
 0x2ef   :  { %3590 = vtanh.f32 %v1833_v59  ;;  %v5315_v59 = vld [vmem:[#allocation20_spill] sm:$0xff] }
 0x2f5   :  { %v3591_v47 = vpop.eup %3590 }
 0x2f6   :  { %v1867_v62 = vand.u32 4294901760, %v3591_v47 }
 0x2f8   :  { %1973 = vmatmul.f32.vlgmr.msrb.gmra.mxu1 %v1867_v62  ;;  %v1868_v39 = vsub.f32 %v3591_v47, %v1867_v62  ;;  %v5314_v47 = vld [vmem:[#allocation41_spill] sm:$0xff] }
 0x2f9   :  { %2375 = vmatpush.msrb.mxu1 %v3746_v28 }
 0x2fa   :  { %2027 = vmatmul.f32.vlgmr.msrb.gmra.mxu2 %v1868_v39  ;;  %v1869_v49 = vand.u32 4294901760, %v1868_v39 }
 0x2fb   :  { %2377 = vmatpush.msrb.mxu1 %v3771_v45  ;;  %2416 = vmatpush.msrb.mxu2 %v5231_v40 }
 0x2fc   :  { %2066 = vmatmul.f32.vlgmr.msrb.gmra.mxu3 %v1869_v49  ;;  %v1870_v18 = vsub.f32 %v1868_v39, %v1869_v49  ;;  %v5311_v49 = vld [vmem:[#allocation40_spill] sm:$0xff]  ;;  %v5312_v39 = vld [vmem:[#allocation18_spill] sm:$0xff] }
 0x2fd   :  { %2379 = vmatpush.msrb.mxu1 %v3773_v46  ;;  %2483 = vmatpush.msrb.mxu3 %v3746_v28 }
 0x2fe   :  { %v1871_v2 = vand.u32 4294901760, %v1870_v18  ;;  %2420 = vmatpush.msrb.mxu2 %v5232_v3  ;;  %v5326_v18 = vld [vmem:[#allocation47_spill] sm:$0xff] }
 0x2ff   :  { %2381 = vmatpush.msrb.mxu1 %v3788_v52  ;;  %2485 = vmatpush.msrb.mxu3 %v3771_v45 }
 0x300   :  { %1872 = vmatmul.f32.vlgmr.msrb.gmra.mxu0 %v1871_v2  ;;  %2172 = vmatmul.f32.vlgmr.msra.gmra.mxu1 %v1867_v62  ;;  %v5327_v2 = vld [vmem:[#allocation48_spill] sm:$0xff] }
 0x301   :  { %2322 = vmatpush.msrb.mxu0 %v3769_v44  ;;  %2383 = vmatpush.msrb.mxu1 %v3794_v56 }
 0x302   :  { %2487 = vmatpush.msrb.mxu3 %v3773_v46  ;;  %2424 = vmatpush.msrb.mxu2 %v5233_v10 }
 0x303   :  { %2325 = vmatpush.msrb.mxu0 %v3786_v51  ;;  %2385 = vmatpush.msrb.mxu1 %v3810_v0 }
 0x304   :  { %2489 = vmatpush.msrb.mxu3 %v3788_v52  ;;  %2428 = vmatpush.msrb.mxu2 %v5234_v13 }
 0x305   :  { %2328 = vmatpush.msrb.mxu0 %v3792_v55  ;;  %2387 = vmatpush.msrb.mxu1 %v3833_v9 }
 0x306   :  { %2491 = vmatpush.msrb.mxu3 %v3794_v56  ;;  %2432 = vmatpush.msrb.mxu2 %v5235_v17 }
 0x307   :  { %2331 = vmatpush.msrb.mxu0 %v3803_v61  ;;  %2389 = vmatpush.msrb.mxu1 %v3846_v24 }
 0x308   :  { %2135 = vmatmul.f32.vlgmr.msra.gmra.mxu0 %v1867_v62  ;;  %2493 = vmatpush.msrb.mxu3 %v3810_v0  ;;  %v5313_v62 = vld [vmem:[#allocation44_spill] sm:$0xff] }
 0x309   :  { %2334 = vmatpush.msrb.mxu0 %v3813_v1  ;;  %2391 = vmatpush.msrb.mxu1 %v3863_v36 }
 0x30a   :  { %2495 = vmatpush.msrb.mxu3 %v3833_v9  ;;  %2436 = vmatpush.msrb.mxu2 %v5236_v27 }
 0x30b   :  { %2337 = vmatpush.msrb.mxu0 %v3836_v12  ;;  %2393 = vmatpush.msrb.mxu1 %v3882_v53 }
 0x30c   :  { %2497 = vmatpush.msrb.mxu3 %v3846_v24  ;;  %2440 = vmatpush.msrb.mxu2 %v5237_v32 }
 0x30d   :  { %2340 = vmatpush.msrb.mxu0 %v3858_v33  ;;  %2395 = vmatpush.msrb.mxu1 %v3904_v15 }
 0x30e   :  { %2499 = vmatpush.msrb.mxu3 %v3863_v36  ;;  %2444 = vmatpush.msrb.mxu2 %v5238_v22 }
 0x30f   :  { %2343 = vmatpush.msrb.mxu0 %v3866_v37  ;;  %2397 = vmatpush.msrb.mxu1 %v3924_v35 }
 0x310   :  { %2501 = vmatpush.msrb.mxu3 %v3882_v53  ;;  %2448 = vmatpush.msrb.mxu2 %v3902_v14 }
 0x311   :  { %2346 = vmatpush.msrb.mxu0 %v3885_v57  ;;  %2399 = vmatpush.msrb.mxu1 %v3939_v7 }
 0x312   :  { %2503 = vmatpush.msrb.mxu3 %v3904_v15  ;;  %2452 = vmatpush.msrb.mxu2 %v3922_v43 }
 0x313   :  { %2349 = vmatpush.msrb.mxu0 %v3907_v21  ;;  %2401 = vmatpush.msrb.mxu1 %v3959_v50 }
 0x314   :  { %2505 = vmatpush.msrb.mxu3 %v3924_v35  ;;  %2456 = vmatpush.msrb.mxu2 %v5245_v41 }
 0x315   :  { %2352 = vmatpush.msrb.mxu0 %v5246_v5  ;;  %2403 = vmatpush.msrb.mxu1 %v5247_v11 }
 0x316   :  { %2507 = vmatpush.msrb.mxu3 %v3939_v7  ;;  %2460 = vmatpush.msrb.mxu2 %v5248_v26 }
 0x317   :  { %2355 = vmatpush.msrb.mxu0 %v5249_v54  ;;  %2405 = vmatpush.msrb.mxu1 %v5250_v31 }
 0x318   :  { %2509 = vmatpush.msrb.mxu3 %v3959_v50  ;;  %2464 = vmatpush.msrb.mxu2 %v5251_v25 }
 0x319   :  { %2358 = vmatpush.msrb.mxu0 %v5252_v42  ;;  %2567 = vmatpush.msra.mxu1 %v5253_v23 }
 0x31a   :  { %2511 = vmatpush.msrb.mxu3 %v5247_v11  ;;  %2468 = vmatpush.msrb.mxu2 %v5254_v38 }
 0x31b   :  { %2361 = vmatpush.msrb.mxu0 %v5255_v48  ;;  %2573 = vmatpush.msra.mxu1 %v5256_v20 }
 0x31c   :  { %2513 = vmatpush.msrb.mxu3 %v5250_v31  ;;  %2472 = vmatpush.msrb.mxu2 %v5257_v19 }
 0x31d   :  { %2364 = vmatpush.msrb.mxu0 %v5311_v49  ;;  %2579 = vmatpush.msra.mxu1 %v5312_v39 }
 0x31e   :  { %2476 = vmatpush.msrb.mxu2 %v5313_v62 }
 0x31f   :  { %2367 = vmatpush.msrb.mxu0 %v5314_v47  ;;  %2585 = vmatpush.msra.mxu1 %v5315_v59 }
 0x321   :  { %2522 = vmatpush.msra.mxu0 %v3746_v28  ;;  %2591 = vmatpush.msra.mxu1 %v5316_v4 }
 0x323   :  { %2524 = vmatpush.msra.mxu0 %v3771_v45  ;;  %2597 = vmatpush.msra.mxu1 %v5317_v58 }
 0x325   :  { %2526 = vmatpush.msra.mxu0 %v3773_v46  ;;  %2603 = vmatpush.msra.mxu1 %v5318_v30 }
 0x327   :  { %2528 = vmatpush.msra.mxu0 %v3788_v52  ;;  %2609 = vmatpush.msra.mxu1 %v5319_v8 }
 0x329   :  { %2530 = vmatpush.msra.mxu0 %v3794_v56  ;;  %2615 = vmatpush.msra.mxu1 %v5320_v60 }
 0x32b   :  { %2532 = vmatpush.msra.mxu0 %v3810_v0  ;;  %2621 = vmatpush.msra.mxu1 %v5321_v63 }
 0x32d   :  { %2534 = vmatpush.msra.mxu0 %v3833_v9  ;;  %2627 = vmatpush.msra.mxu1 %v5322_v34 }
 0x32f   :  { %2536 = vmatpush.msra.mxu0 %v3846_v24  ;;  %2633 = vmatpush.msra.mxu1 %v5323_v16 }
 0x331   :  { %2538 = vmatpush.msra.mxu0 %v3863_v36  ;;  %2639 = vmatpush.msra.mxu1 %v5324_v6 }
 0x333   :  { %2540 = vmatpush.msra.mxu0 %v3882_v53  ;;  %2645 = vmatpush.msra.mxu1 %v5325_v29 }
 0x335   :  { %2542 = vmatpush.msra.mxu0 %v3904_v15  ;;  %2651 = vmatpush.msra.mxu1 %v5326_v18 }
 0x337   :  { %2544 = vmatpush.msra.mxu0 %v3924_v35  ;;  %2657 = vmatpush.msra.mxu1 %v5327_v2  ;;  %v5328_v2 = vld [vmem:[#allocation9_spill] sm:$0xff] }
 0x339   :  { %2546 = vmatpush.msra.mxu0 %v3939_v7 }
 0x33b   :  { %2548 = vmatpush.msra.mxu0 %v3959_v50 }
 0x33d   :  { %2550 = vmatpush.msra.mxu0 %v5247_v11 }
 0x33f   :  { %2552 = vmatpush.msra.mxu0 %v5250_v31 }
 0x375   :  { %v1974_v6 = vpop.f32.mrf.mxu1 }
 0x37d   :  { %v1873_v16 = vpop.f32.mrf.mxu0  ;;  %v2028_v29 = vpop.f32.mrf.mxu2 }
 0x37e   :  { %v1975_v34 = vadd.f32 %v1974_v6, %v1873_v16  ;;  %v2173_v58 = vpop.f32.mrf.mxu1  ;;  %v5341_v16 = vld [vmem:[#allocation42_spill] sm:$0xff]  ;;  %v5342_v6 = vld [vmem:[#allocation45_spill] sm:$0xff] }
 0x37f   :  { %v2067_v60 = vpop.f32.mrf.mxu3 }
 0x380   :  { %v2029_v63 = vadd.f32 %v2028_v29, %v1975_v34  ;;  %v5340_v34 = vld [vmem:[#allocation39_spill] sm:$0xff]  ;;  %v5343_v29 = vld [vmem:[#allocation46_spill] sm:$0xff] }
 0x382   :  { %v2068_v8 = vadd.f32 %v2067_v60, %v2029_v63  ;;  %v5339_v63 = vld [vmem:[#allocation36_spill] sm:$0xff] }
 0x385   :  { %v2136_v18 = vpop.f32.mrf.mxu0 }
 0x386   :  { %v2137_v30 = vadd.f32 %v2136_v18, %v2068_v8  ;;  %v5338_v8 = vld [vmem:[#allocation32_spill] sm:$0xff]  ;;  %v5344_v18 = vld [vmem:[#allocation47_spill] sm:$0xff] }
 0x388   :  { %v2174_v4 = vadd.f32 %v2173_v58, %v2137_v30  ;;  %v5336_v58 = vld [vmem:[#allocation25_spill] sm:$0xff]  ;;  %v5337_v30 = vld [vmem:[#allocation28_spill] sm:$0xff] }
 0x38a   :  { %v2176_v59 = vadd.f32 %v2174_v4, %v5328_v2  ;;  %v5345_v2 = vld [vmem:[#allocation48_spill] sm:$0xff] }
 0x38c   :  { %3592 = vtanh.f32 %v2176_v59  ;;  %v5334_v59 = vld [vmem:[#allocation23_spill] sm:$0xff] }
 0x392   :  { %v3593_v47 = vpop.eup %3592 }
 0x393   :  { %v2210_v62 = vand.u32 4294901760, %v3593_v47 }
 0x395   :  { %2316 = vmatmul.f32.vlgmr.msra.gmra.mxu3 %v2210_v62  ;;  %v2211_v39 = vsub.f32 %v3593_v47, %v2210_v62  ;;  %v5332_v47 = vld [vmem:[#allocation41_spill] sm:$0xff] }
 0x396   :  { %2718 = vmatpush.msra.mxu3 %v3746_v28 }
 0x397   :  { %2370 = vmatmul.f32.vlgmr.msrb.gmra.mxu0 %v2211_v39  ;;  %v2212_v49 = vand.u32 4294901760, %v2211_v39 }
 0x398   :  { %2720 = vmatpush.msra.mxu3 %v3771_v45  ;;  %2759 = vmatpush.msrb.mxu0 %v5231_v40 }
 0x399   :  { %2409 = vmatmul.f32.vlgmr.msrb.gmra.mxu1 %v2212_v49  ;;  %v2213_v60 = vsub.f32 %v2211_v39, %v2212_v49  ;;  %v5329_v49 = vld [vmem:[#allocation40_spill] sm:$0xff]  ;;  %v5330_v39 = vld [vmem:[#allocation18_spill] sm:$0xff] }
 0x39a   :  { %2722 = vmatpush.msra.mxu3 %v3773_v46  ;;  %2826 = vmatpush.msrb.mxu1 %v3746_v28 }
 0x39b   :  { %v2214_v4 = vand.u32 4294901760, %v2213_v60  ;;  %2763 = vmatpush.msrb.mxu0 %v5232_v3 }
 0x39c   :  { %2724 = vmatpush.msra.mxu3 %v3788_v52  ;;  %2828 = vmatpush.msrb.mxu1 %v3771_v45 }
 0x39d   :  { %2215 = vmatmul.f32.vlgmr.msra.gmra.mxu2 %v2214_v4  ;;  %2515 = vmatmul.f32.vlgmr.msrb.gmra.mxu3 %v2210_v62 }
 0x39e   :  { %2665 = vmatpush.msra.mxu2 %v3769_v44  ;;  %2726 = vmatpush.msra.mxu3 %v3794_v56 }
 0x39f   :  { %2830 = vmatpush.msrb.mxu1 %v3773_v46  ;;  %2767 = vmatpush.msrb.mxu0 %v5233_v10 }
 0x3a0   :  { %2668 = vmatpush.msra.mxu2 %v3786_v51  ;;  %2728 = vmatpush.msra.mxu3 %v3810_v0 }
 0x3a1   :  { %2832 = vmatpush.msrb.mxu1 %v3788_v52  ;;  %2771 = vmatpush.msrb.mxu0 %v5234_v13 }
 0x3a2   :  { %2671 = vmatpush.msra.mxu2 %v3792_v55  ;;  %2730 = vmatpush.msra.mxu3 %v3833_v9 }
 0x3a3   :  { %2834 = vmatpush.msrb.mxu1 %v3794_v56  ;;  %2775 = vmatpush.msrb.mxu0 %v5235_v17 }
 0x3a4   :  { %2674 = vmatpush.msra.mxu2 %v3803_v61  ;;  %2732 = vmatpush.msra.mxu3 %v3846_v24 }
 0x3a5   :  { %2478 = vmatmul.f32.vlgmr.msrb.gmra.mxu2 %v2210_v62  ;;  %2836 = vmatpush.msrb.mxu1 %v3810_v0  ;;  %v5331_v62 = vld [vmem:[#allocation44_spill] sm:$0xff] }
 0x3a6   :  { %2677 = vmatpush.msra.mxu2 %v3813_v1  ;;  %2734 = vmatpush.msra.mxu3 %v3863_v36 }
 0x3a7   :  { %2838 = vmatpush.msrb.mxu1 %v3833_v9  ;;  %2779 = vmatpush.msrb.mxu0 %v5236_v27 }
 0x3a8   :  { %2680 = vmatpush.msra.mxu2 %v3836_v12  ;;  %2736 = vmatpush.msra.mxu3 %v3882_v53 }
 0x3a9   :  { %2840 = vmatpush.msrb.mxu1 %v3846_v24  ;;  %2783 = vmatpush.msrb.mxu0 %v5237_v32 }
 0x3aa   :  { %2683 = vmatpush.msra.mxu2 %v3858_v33  ;;  %2738 = vmatpush.msra.mxu3 %v3904_v15 }
 0x3ab   :  { %2842 = vmatpush.msrb.mxu1 %v3863_v36  ;;  %2787 = vmatpush.msrb.mxu0 %v5238_v22 }
 0x3ac   :  { %2686 = vmatpush.msra.mxu2 %v3866_v37  ;;  %2740 = vmatpush.msra.mxu3 %v3924_v35 }
 0x3ad   :  { %2844 = vmatpush.msrb.mxu1 %v3882_v53  ;;  %2791 = vmatpush.msrb.mxu0 %v3902_v14 }
 0x3ae   :  { %2689 = vmatpush.msra.mxu2 %v3885_v57  ;;  %2742 = vmatpush.msra.mxu3 %v3939_v7 }
 0x3af   :  { %2846 = vmatpush.msrb.mxu1 %v3904_v15  ;;  %2795 = vmatpush.msrb.mxu0 %v3922_v43 }
 0x3b0   :  { %2692 = vmatpush.msra.mxu2 %v3907_v21  ;;  %2744 = vmatpush.msra.mxu3 %v3959_v50 }
 0x3b1   :  { %2848 = vmatpush.msrb.mxu1 %v3924_v35  ;;  %2799 = vmatpush.msrb.mxu0 %v5245_v41 }
 0x3b2   :  { %2695 = vmatpush.msra.mxu2 %v5246_v5  ;;  %2746 = vmatpush.msra.mxu3 %v5247_v11 }
 0x3b3   :  { %2850 = vmatpush.msrb.mxu1 %v3939_v7  ;;  %2803 = vmatpush.msrb.mxu0 %v5248_v26 }
 0x3b4   :  { %2698 = vmatpush.msra.mxu2 %v5249_v54  ;;  %2748 = vmatpush.msra.mxu3 %v5250_v31 }
 0x3b5   :  { %2852 = vmatpush.msrb.mxu1 %v3959_v50  ;;  %2807 = vmatpush.msrb.mxu0 %v5251_v25 }
 0x3b6   :  { %2701 = vmatpush.msra.mxu2 %v5252_v42  ;;  %2910 = vmatpush.msrb.mxu3 %v5253_v23  ;;  %v5333_v23 = vld [vmem:[#allocation20_spill] sm:$0xff] }
 0x3b7   :  { %2854 = vmatpush.msrb.mxu1 %v5247_v11  ;;  %2811 = vmatpush.msrb.mxu0 %v5254_v38 }
 0x3b8   :  { %2704 = vmatpush.msra.mxu2 %v5255_v48  ;;  %2916 = vmatpush.msrb.mxu3 %v5256_v20  ;;  %v5335_v20 = vld [vmem:[#allocation24_spill] sm:$0xff] }
 0x3b9   :  { %2856 = vmatpush.msrb.mxu1 %v5250_v31  ;;  %2815 = vmatpush.msrb.mxu0 %v5257_v19 }
 0x3ba   :  { %2707 = vmatpush.msra.mxu2 %v5329_v49  ;;  %2922 = vmatpush.msrb.mxu3 %v5330_v39 }
 0x3bb   :  { %2819 = vmatpush.msrb.mxu0 %v5331_v62 }
 0x3bc   :  { %2710 = vmatpush.msra.mxu2 %v5332_v47  ;;  %2928 = vmatpush.msrb.mxu3 %v5333_v23 }
 0x3be   :  { %2865 = vmatpush.msrb.mxu2 %v3746_v28  ;;  %2934 = vmatpush.msrb.mxu3 %v5334_v59 }
 0x3c0   :  { %2867 = vmatpush.msrb.mxu2 %v3771_v45  ;;  %2940 = vmatpush.msrb.mxu3 %v5335_v20 }
 0x3c2   :  { %2869 = vmatpush.msrb.mxu2 %v3773_v46  ;;  %2946 = vmatpush.msrb.mxu3 %v5336_v58 }
 0x3c4   :  { %2871 = vmatpush.msrb.mxu2 %v3788_v52  ;;  %2952 = vmatpush.msrb.mxu3 %v5337_v30 }
 0x3c6   :  { %2873 = vmatpush.msrb.mxu2 %v3794_v56  ;;  %2958 = vmatpush.msrb.mxu3 %v5338_v8 }
 0x3c8   :  { %2875 = vmatpush.msrb.mxu2 %v3810_v0  ;;  %2964 = vmatpush.msrb.mxu3 %v5339_v63 }
 0x3ca   :  { %2877 = vmatpush.msrb.mxu2 %v3833_v9  ;;  %2970 = vmatpush.msrb.mxu3 %v5340_v34 }
 0x3cc   :  { %2879 = vmatpush.msrb.mxu2 %v3846_v24  ;;  %2976 = vmatpush.msrb.mxu3 %v5341_v16  ;;  %v5346_v16 = vld [vmem:[#allocation11_spill] sm:$0xff] }
 0x3ce   :  { %2881 = vmatpush.msrb.mxu2 %v3863_v36  ;;  %2982 = vmatpush.msrb.mxu3 %v5342_v6 }
 0x3d0   :  { %2883 = vmatpush.msrb.mxu2 %v3882_v53  ;;  %2988 = vmatpush.msrb.mxu3 %v5343_v29 }
 0x3d2   :  { %2885 = vmatpush.msrb.mxu2 %v3904_v15  ;;  %2994 = vmatpush.msrb.mxu3 %v5344_v18 }
 0x3d4   :  { %2887 = vmatpush.msrb.mxu2 %v3924_v35  ;;  %3000 = vmatpush.msrb.mxu3 %v5345_v2 }
 0x3d6   :  { %2889 = vmatpush.msrb.mxu2 %v3939_v7 }
 0x3d8   :  { %2891 = vmatpush.msrb.mxu2 %v3959_v50 }
 0x3da   :  { %2893 = vmatpush.msrb.mxu2 %v5247_v11 }
 0x3dc   :  { %2895 = vmatpush.msrb.mxu2 %v5250_v31 }
 0x414   :  { %v2371_v23 = vpop.f32.mrf.mxu0 }
 0x416   :  { %v2410_v20 = vpop.f32.mrf.mxu1 }
 0x418   :  { %v2317_v60 = vpop.f32.mrf.mxu3 }
 0x420   :  { %v2216_v4 = vpop.f32.mrf.mxu2  ;;  %v2516_v63 = vpop.f32.mrf.mxu3 }
 0x421   :  { %v2318_v39 = vadd.f32 %v2317_v60, %v2216_v4 }
 0x423   :  { %v2372_v59 = vadd.f32 %v2371_v23, %v2318_v39 }
 0x425   :  { %v2411_v58 = vadd.f32 %v2410_v20, %v2372_v59 }
 0x428   :  { %v2479_v30 = vpop.f32.mrf.mxu2 }
 0x429   :  { %v2480_v8 = vadd.f32 %v2479_v30, %v2411_v58 }
 0x42b   :  { %v2517_v34 = vadd.f32 %v2516_v63, %v2480_v8 }
 0x42d   :  { %v2519_v6 = vadd.f32 %v2517_v34, %v5346_v16 }
 0x42f   :  { %3594 = vtanh.f32 %v2519_v6 }
 0x435   :  { %v3595_v29 = vpop.eup %3594 }
 0x436   :  { %v2553_v18 = vand.u32 4294901760, %v3595_v29 }
 0x438   :  { %2659 = vmatmul.f32.vlgmr.msra.gmra.mxu1 %v2553_v18  ;;  %v2554_v2 = vsub.f32 %v3595_v29, %v2553_v18 }
 0x439   :  { %3061 = vmatpush.msra.mxu1 %v3746_v28 }
 0x43a   :  { %2713 = vmatmul.f32.vlgmr.msra.gmra.mxu2 %v2554_v2  ;;  %v2555_v47 = vand.u32 4294901760, %v2554_v2 }
 0x43b   :  { %3063 = vmatpush.msra.mxu1 %v3771_v45  ;;  %3102 = vmatpush.msra.mxu2 %v5231_v40 }
 0x43c   :  { %2752 = vmatmul.f32.vlgmr.msra.gmra.mxu3 %v2555_v47  ;;  %v2556_v60 = vsub.f32 %v2554_v2, %v2555_v47 }
 0x43d   :  { %3065 = vmatpush.msra.mxu1 %v3773_v46  ;;  %3169 = vmatpush.msra.mxu3 %v3746_v28  ;;  %v5347_v28 = vld [vmem:[#allocation41_spill] sm:$0xff] }
 0x43e   :  { %v2557_v4 = vand.u32 4294901760, %v2556_v60  ;;  %3106 = vmatpush.msra.mxu2 %v5232_v3 }
 0x43f   :  { %3067 = vmatpush.msra.mxu1 %v3788_v52  ;;  %3171 = vmatpush.msra.mxu3 %v3771_v45 }
 0x440   :  { %2558 = vmatmul.f32.vlgmr.msra.gmra.mxu0 %v2557_v4  ;;  %2858 = vmatmul.f32.vlgmr.msrb.gmra.mxu1 %v2553_v18 }
 0x441   :  { %3008 = vmatpush.msra.mxu0 %v3769_v44  ;;  %3069 = vmatpush.msra.mxu1 %v3794_v56 }
 0x442   :  { %3173 = vmatpush.msra.mxu3 %v3773_v46  ;;  %3110 = vmatpush.msra.mxu2 %v5233_v10 }
 0x443   :  { %3011 = vmatpush.msra.mxu0 %v3786_v51  ;;  %3071 = vmatpush.msra.mxu1 %v3810_v0 }
 0x444   :  { %3175 = vmatpush.msra.mxu3 %v3788_v52  ;;  %3114 = vmatpush.msra.mxu2 %v5234_v13 }
 0x445   :  { %3014 = vmatpush.msra.mxu0 %v3792_v55  ;;  %3073 = vmatpush.msra.mxu1 %v3833_v9 }
 0x446   :  { %3177 = vmatpush.msra.mxu3 %v3794_v56  ;;  %3118 = vmatpush.msra.mxu2 %v5235_v17 }
 0x447   :  { %3017 = vmatpush.msra.mxu0 %v3803_v61  ;;  %3075 = vmatpush.msra.mxu1 %v3846_v24  ;;  %v3222_v61 = vld [vmem:[#allocation4 + $0x78] sm:$0xff] }
 0x448   :  { %2821 = vmatmul.f32.vlgmr.msrb.gmra.mxu0 %v2553_v18  ;;  %3179 = vmatpush.msra.mxu3 %v3810_v0  ;;  %v3221_v0 = vld [vmem:[#allocation4 + $0x70] sm:$0xff] }
 0x449   :  { %3020 = vmatpush.msra.mxu0 %v3813_v1  ;;  %3077 = vmatpush.msra.mxu1 %v3863_v36  ;;  %v3220_v1 = vld [vmem:[#allocation4 + $0x68] sm:$0xff] }
 0x44a   :  { %3181 = vmatpush.msra.mxu3 %v3833_v9  ;;  %3122 = vmatpush.msra.mxu2 %v5236_v27  ;;  %v5348_v27 = vld [vmem:[#allocation12_spill] sm:$0xff] }
 0x44b   :  { %3023 = vmatpush.msra.mxu0 %v3836_v12  ;;  %3079 = vmatpush.msra.mxu1 %v3882_v53  ;;  %v4857_v12 = vand.u32 4294901760, %v3222_v61 }
 0x44c   :  { %3183 = vmatpush.msra.mxu3 %v3846_v24  ;;  %3126 = vmatpush.msra.mxu2 %v5237_v32  ;;  %v4859_v24 = vand.u32 4294901760, %v3221_v0 }
 0x44d   :  { %3026 = vmatpush.msra.mxu0 %v3858_v33  ;;  %3081 = vmatpush.msra.mxu1 %v3904_v15  ;;  %v4861_v33 = vand.u32 4294901760, %v3220_v1 }
 0x44e   :  { %3185 = vmatpush.msra.mxu3 %v3863_v36  ;;  %3130 = vmatpush.msra.mxu2 %v5238_v22  ;;  %v3218_v36 = vld [vmem:[#allocation4 + $0x58] sm:$0xff]  ;;  %v4873_v22 = vsub.f32 %v3221_v0, %v4859_v24  ;;  %v3213_v0 = vld [vmem:[#allocation4 + $0x30] sm:$0xff] }
 0x44f   :  { %3029 = vmatpush.msra.mxu0 %v3866_v37  ;;  %3083 = vmatpush.msra.mxu1 %v3924_v35  ;;  %v3217_v37 = vld [vmem:[#allocation4 + $0x50] sm:$0xff]  ;;  %v4876_v40 = vsub.f32 %v3220_v1, %v4861_v33  ;;  %v4966_v1 = vand.u32 4294901760, %v3213_v0 }
 0x450   :  { %3187 = vmatpush.msra.mxu3 %v3882_v53  ;;  %3134 = vmatpush.msra.mxu2 %v3902_v14  ;;  %v4865_v14 = vand.u32 4294901760, %v3218_v36 }
 0x451   :  { %3032 = vmatpush.msra.mxu0 %v3885_v57  ;;  %3085 = vmatpush.msra.mxu1 %v3939_v7 }
 0x452   :  { %3189 = vmatpush.msra.mxu3 %v3904_v15  ;;  %3138 = vmatpush.msra.mxu2 %v3922_v43  ;;  %v4867_v15 = vand.u32 4294901760, %v3217_v37  ;;  %v4883_v10 = vsub.f32 %v3218_v36, %v4865_v14 }
 0x453   :  { %3035 = vmatpush.msra.mxu0 %v3907_v21  ;;  %3087 = vmatpush.msra.mxu1 %v3959_v50  ;;  %v3216_v21 = vld [vmem:[#allocation4 + $0x48] sm:$0xff] }
 0x454   :  { %3191 = vmatpush.msra.mxu3 %v3924_v35  ;;  %3142 = vmatpush.msra.mxu2 %v5245_v41  ;;  %v3219_v35 = vld [vmem:[#allocation4 + $0x60] sm:$0xff]  ;;  %v4886_v13 = vsub.f32 %v3217_v37, %v4867_v15  ;;  %v4888_v17 = vand.u32 4294901760, %v3216_v21 }
 0x455   :  { %3038 = vmatpush.msra.mxu0 %v5246_v5  ;;  %3089 = vmatpush.msra.mxu1 %v5247_v11  ;;  %v4863_v57 = vand.u32 4294901760, %v3219_v35  ;;  %v3276_v5 = vand.u32 4294901760, %v4873_v22  ;;  %v3211_v37 = vld [vmem:[#allocation4 + $0x20] sm:$0xff] }
 0x456   :  { %3193 = vmatpush.msra.mxu3 %v3939_v7  ;;  %3146 = vmatpush.msra.mxu2 %v5248_v26  ;;  %v4870_v7 = vsub.f32 %v3222_v61, %v4857_v12 }
 0x457   :  { %3041 = vmatpush.msra.mxu0 %v5249_v54  ;;  %3091 = vmatpush.msra.mxu1 %v5250_v31  ;;  %v4880_v3 = vsub.f32 %v3219_v35, %v4863_v57  ;;  %v3294_v54 = vand.u32 4294901760, %v4883_v10  ;;  %v4969_v35 = vsub.f32 %v3213_v0, %v4966_v1 }
 0x458   :  { %3195 = vmatpush.msra.mxu3 %v3959_v50  ;;  %3150 = vmatpush.msra.mxu2 %v5251_v25  ;;  %v3270_v41 = vand.u32 4294901760, %v4870_v7  ;;  %v3215_v25 = vld [vmem:[#allocation4 + $0x40] sm:$0xff] }
 0x459   :  { %3044 = vmatpush.msra.mxu0 %v5252_v42  ;;  %v3288_v26 = vand.u32 4294901760, %v4880_v3  ;;  %v4915_v23 = vand.u32 4294901760, %v3215_v25  ;;  %v3295_v59 = vsub.f32 %v4883_v10, %v3294_v54 }
 0x45a   :  { %3197 = vmatpush.msra.mxu3 %v5247_v11  ;;  %3154 = vmatpush.msra.mxu2 %v5254_v38  ;;  %v3282_v11 = vand.u32 4294901760, %v4876_v40  ;;  %v3271_v42 = vsub.f32 %v4870_v7, %v3270_v41  ;;  %v3277_v38 = vsub.f32 %v4873_v22, %v3276_v5 }
 0x45b   :  { %3047 = vmatpush.msra.mxu0 %v5255_v48  ;;  %v3289_v39 = vsub.f32 %v4880_v3, %v3288_v26  ;;  %v4922_v30 = vsub.f32 %v3215_v25, %v4915_v23  ;;  %v3296_v2 = vand.u32 4294901760, %v3295_v59 }
 0x45c   :  { %3199 = vmatpush.msra.mxu3 %v5250_v31  ;;  %3158 = vmatpush.msra.mxu2 %v5257_v19  ;;  %v4898_v31 = vsub.f32 %v3216_v21, %v4888_v17  ;;  %v3283_v48 = vsub.f32 %v4876_v40, %v3282_v11  ;;  %v3300_v19 = vand.u32 4294901760, %v4886_v13  ;;  %v3278_v47 = vand.u32 4294901760, %v3277_v38 }
 0x45d   :  { %3050 = vmatpush.msra.mxu0 %v5329_v49  ;;  %v3214_v49 = vld [vmem:[#allocation4 + $0x38] sm:$0xff]  ;;  %v3290_v34 = vand.u32 4294901760, %v3289_v39  ;;  %v3312_v6 = vand.u32 4294901760, %v4922_v30 }
 0x45e   :  { %3162 = vmatpush.msra.mxu2 %v5331_v62  ;;  %v3272_v62 = vand.u32 4294901760, %v3271_v42  ;;  %v3284_v20 = vand.u32 4294901760, %v3283_v48  ;;  %v3306_v58 = vand.u32 4294901760, %v4898_v31  ;;  %v4925_v8 = vand.u32 4294901760, %v3214_v49  ;;  %v3209_v48 = vld [vmem:[#allocation4 + $0x10] sm:$0xff] }
 0x45f   :  { %3053 = vmatpush.msra.mxu0 %v5347_v28  ;;  %v3301_v16 = vsub.f32 %v4886_v13, %v3300_v19  ;;  %v5005_v59 = vand.u32 4294901760, %v3209_v48 }
 0x460   :  { %3273 = vmatpush.msrb.mxu1 %v3272_v62  ;;  %v4932_v29 = vsub.f32 %v3214_v49, %v4925_v8  ;;  %v3307_v60 = vsub.f32 %v4898_v31, %v3306_v58 }
 0x461   :  { %3228 = vmatpush.msrb.mxu0 %v4857_v12 }
 0x462   :  { %3279 = vmatpush.msrb.mxu1 %v3278_v47  ;;  %v3318_v4 = vand.u32 4294901760, %v4932_v29 }
 0x463   :  { %3230 = vmatpush.msrb.mxu0 %v4859_v24 }
 0x464   :  { %3285 = vmatpush.msrb.mxu1 %v3284_v20  ;;  %v3208_v20 = vld [vmem:[#allocation4 + $0x8] sm:$0xff] }
 0x465   :  { %3232 = vmatpush.msrb.mxu0 %v4861_v33 }
 0x466   :  { %3291 = vmatpush.msrb.mxu1 %v3290_v34 }
 0x467   :  { %3234 = vmatpush.msrb.mxu0 %v4863_v57 }
 0x468   :  { %3297 = vmatpush.msrb.mxu1 %v3296_v2  ;;  %v3347_v2 = vsub.f32 %v3209_v48, %v5005_v59 }
 0x469   :  { %3236 = vmatpush.msrb.mxu0 %v4865_v14 }
 0x46b   :  { %3238 = vmatpush.msrb.mxu0 %v4867_v15 }
 0x46d   :  { %3240 = vmatpush.msrb.mxu0 %v4888_v17 }
 0x46f   :  { %3242 = vmatpush.msrb.mxu0 %v4915_v23 }
 0x471   :  { %3244 = vmatpush.msrb.mxu0 %v4925_v8 }
 0x473   :  { %3246 = vmatpush.msrb.mxu0 %v4966_v1 }
 0x4b5   :  { %v2660_v44 = vpop.f32.mrf.mxu1 }
 0x4bd   :  { %v2559_v45 = vpop.f32.mrf.mxu0  ;;  %v2714_v50 = vpop.f32.mrf.mxu2 }
 0x4be   :  { %v2661_v46 = vadd.f32 %v2660_v44, %v2559_v45  ;;  %v2859_v53 = vpop.f32.mrf.mxu1  ;;  %v3302_v44 = vand.u32 4294901760, %v3301_v16  ;;  %v3313_v45 = vsub.f32 %v4922_v30, %v3312_v6 }
 0x4bf   :  { %v2753_v52 = vpop.f32.mrf.mxu3 }
 0x4c0   :  { %v2715_v51 = vadd.f32 %v2714_v50, %v2661_v46  ;;  %v3308_v50 = vand.u32 4294901760, %v3307_v60  ;;  %3303 = vmatpush.msrb.mxu1 %v3302_v44  ;;  %v3207_v60 = vld [vmem:[#allocation4] sm:$0xff] }
 0x4c2   :  { %v2754_v55 = vadd.f32 %v2753_v52, %v2715_v51  ;;  %v3319_v51 = vsub.f32 %v4932_v29, %v3318_v4  ;;  %3309 = vmatpush.msrb.mxu1 %v3308_v50  ;;  %v3348_v50 = vand.u32 4294901760, %v3347_v2 }
 0x4c4   :  { %v3320_v61 = vand.u32 4294901760, %v3319_v51 }
 0x4c5   :  { %v2822_v56 = vpop.f32.mrf.mxu0 }
 0x4c6   :  { %v2823_v9 = vadd.f32 %v2822_v56, %v2754_v55  ;;  %v3314_v55 = vand.u32 4294901760, %v3313_v45 }
 0x4c8   :  { %v2860_v43 = vadd.f32 %v2859_v53, %v2823_v9  ;;  %3315 = vmatpush.msrb.mxu1 %v3314_v55  ;;  %v3212_v9 = vld [vmem:[#allocation4 + $0x28] sm:$0xff]  ;;  %v3324_v53 = vand.u32 4294901760, %v4969_v35 }
 0x4c9   :  { %v4971_v36 = vand.u32 4294901760, %v3212_v9 }
 0x4ca   :  { %v2862_v32 = vadd.f32 %v2860_v43, %v5348_v27  ;;  %3321 = vmatpush.msrb.mxu1 %v3320_v61  ;;  %v4979_v43 = vand.u32 4294901760, %v3211_v37  ;;  %v3210_v27 = vld [vmem:[#allocation4 + $0x18] sm:$0xff] }
 0x4cb   :  { %v4977_v21 = vsub.f32 %v3212_v9, %v4971_v36  ;;  %3248 = vmatpush.msrb.mxu0 %v4971_v36  ;;  %v4991_v38 = vand.u32 4294901760, %v3210_v27 }
 0x4cc   :  { %3596 = vtanh.f32 %v2862_v32  ;;  %v3325_v32 = vsub.f32 %v4969_v35, %v3324_v53  ;;  %v4989_v42 = vsub.f32 %v3211_v37, %v4979_v43 }
 0x4cd   :  { %v3330_v25 = vand.u32 4294901760, %v4977_v21  ;;  %3250 = vmatpush.msrb.mxu0 %v4979_v43  ;;  %v5001_v39 = vsub.f32 %v3210_v27, %v4991_v38 }
 0x4ce   :  { %v3326_v49 = vand.u32 4294901760, %v3325_v32  ;;  %v3336_v47 = vand.u32 4294901760, %v4989_v42 }
 0x4cf   :  { %v3331_v62 = vsub.f32 %v4977_v21, %v3330_v25  ;;  %3252 = vmatpush.msrb.mxu0 %v4991_v38  ;;  %v3342_v16 = vand.u32 4294901760, %v5001_v39 }
 0x4d0   :  { %3327 = vmatpush.msrb.mxu1 %v3326_v49  ;;  %v3337_v34 = vsub.f32 %v4989_v42, %v3336_v47 }
 0x4d1   :  { %3254 = vmatpush.msrb.mxu0 %v5005_v59  ;;  %v3343_v44 = vsub.f32 %v5001_v39, %v3342_v16 }
 0x4d2   :  { %v3597_v63 = vpop.eup %3596 }
 0x4d3   :  { %v2896_v18 = vand.u32 4294901760, %v3597_v63  ;;  %v3344_v51 = vand.u32 4294901760, %v3343_v44 }
 0x4d5   :  { %3002 = vmatmul.f32.vlgmr.msrb.gmra.mxu3 %v2896_v18  ;;  %v2897_v28 = vsub.f32 %v3597_v63, %v2896_v18  ;;  %v3332_v63 = vand.u32 4294901760, %v3331_v62 }
 0x4d6   :  { %3424 = vmatpush.msrb.mxu3 %v4857_v12 }
 0x4d7   :  { %3056 = vmatmul.f32.vlgmr.msra.gmra.mxu0 %v2897_v28  ;;  %v2898_v46 = vand.u32 4294901760, %v2897_v28  ;;  %3333 = vmatpush.msrb.mxu1 %v3332_v63 }
 0x4d8   :  { %3426 = vmatpush.msrb.mxu3 %v4859_v24 }
 0x4d9   :  { %3095 = vmatmul.f32.vlgmr.msra.gmra.mxu1 %v2898_v46  ;;  %v2899_v52 = vsub.f32 %v2897_v28, %v2898_v46  ;;  %v3338_v28 = vand.u32 4294901760, %v3337_v34  ;;  %v3257_v46 = vand.u32 4294901760, %v3207_v60 }
 0x4da   :  { %3428 = vmatpush.msrb.mxu3 %v4861_v33 }
 0x4db   :  { %v2900_v56 = vand.u32 4294901760, %v2899_v52  ;;  %3339 = vmatpush.msrb.mxu1 %v3338_v28  ;;  %v3359_v55 = vsub.f32 %v3207_v60, %v3257_v46 }
 0x4dc   :  { %3430 = vmatpush.msrb.mxu3 %v4863_v57 }
 0x4dd   :  { %2901 = vmatmul.f32.vlgmr.msrb.gmra.mxu2 %v2900_v56  ;;  %3201 = vmatmul.f32.vlgmr.msra.gmra.mxu3 %v2896_v18  ;;  %v3349_v56 = vsub.f32 %v3347_v2, %v3348_v50  ;;  %v3360_v0 = vand.u32 4294901760, %v3359_v55 }
 0x4de   :  { %3371 = vmatpush.msrb.mxu2 %v4870_v7  ;;  %3432 = vmatpush.msrb.mxu3 %v4865_v14 }
 0x4df   :  { %3345 = vmatpush.msrb.mxu1 %v3344_v51  ;;  %v3350_v9 = vand.u32 4294901760, %v3349_v56  ;;  %v3361_v27 = vsub.f32 %v3359_v55, %v3360_v0 }
 0x4e0   :  { %3374 = vmatpush.msrb.mxu2 %v4873_v22  ;;  %3434 = vmatpush.msrb.mxu3 %v4867_v15 }
 0x4e1   :  { %3351 = vmatpush.msrb.mxu1 %v3350_v9  ;;  %v3362_v32 = vand.u32 4294901760, %v3361_v27 }
 0x4e2   :  { %3377 = vmatpush.msrb.mxu2 %v4876_v40  ;;  %3436 = vmatpush.msrb.mxu3 %v4888_v17 }
 0x4e4   :  { %3380 = vmatpush.msrb.mxu2 %v4880_v3  ;;  %3438 = vmatpush.msrb.mxu3 %v4915_v23 }
 0x4e5   :  { %3164 = vmatmul.f32.vlgmr.msra.gmra.mxu2 %v2896_v18  ;;  %v5012_v18 = vand.u32 4294901760, %v3208_v20 }
 0x4e6   :  { %3383 = vmatpush.msrb.mxu2 %v4883_v10  ;;  %3440 = vmatpush.msrb.mxu3 %v4925_v8 }
 0x4e7   :  { %v3353_v45 = vsub.f32 %v3208_v20, %v5012_v18  ;;  %3256 = vmatpush.msrb.mxu0 %v5012_v18 }
 0x4e8   :  { %3386 = vmatpush.msrb.mxu2 %v4886_v13  ;;  %3442 = vmatpush.msrb.mxu3 %v4966_v1  ;;  %v5349_v13 = vld [vmem:[#allocation13_spill] sm:$0xff] }
 0x4e9   :  { %v3354_v52 = vand.u32 4294901760, %v3353_v45  ;;  %3258 = vmatpush.msrb.mxu0 %v3257_v46 }
 0x4ea   :  { %3389 = vmatpush.msrb.mxu2 %v4898_v31  ;;  %3444 = vmatpush.msrb.mxu3 %v4971_v36 }
 0x4eb   :  { %v3355_v61 = vsub.f32 %v3353_v45, %v3354_v52  ;;  %3465 = vmatpush.msra.mxu0 %v3270_v41 }
 0x4ec   :  { %3392 = vmatpush.msrb.mxu2 %v4922_v30  ;;  %3446 = vmatpush.msrb.mxu3 %v4979_v43 }
 0x4ed   :  { %v3356_v37 = vand.u32 4294901760, %v3355_v61  ;;  %3469 = vmatpush.msra.mxu0 %v3276_v5 }
 0x4ee   :  { %3395 = vmatpush.msrb.mxu2 %v4932_v29  ;;  %3448 = vmatpush.msrb.mxu3 %v4991_v38 }
 0x4ef   :  { %3473 = vmatpush.msra.mxu0 %v3282_v11  ;;  %3357 = vmatpush.msrb.mxu1 %v3356_v37 }
 0x4f0   :  { %3398 = vmatpush.msrb.mxu2 %v4969_v35  ;;  %3450 = vmatpush.msrb.mxu3 %v5005_v59 }
 0x4f1   :  { %3477 = vmatpush.msra.mxu0 %v3288_v26  ;;  %3363 = vmatpush.msrb.mxu1 %v3362_v32 }
 0x4f2   :  { %3401 = vmatpush.msrb.mxu2 %v4977_v21  ;;  %3452 = vmatpush.msrb.mxu3 %v5012_v18 }
 0x4f3   :  { %3532 = vmatpush.msra.mxu1 %v4857_v12  ;;  %3481 = vmatpush.msra.mxu0 %v3294_v54 }
 0x4f4   :  { %3404 = vmatpush.msrb.mxu2 %v4989_v42  ;;  %3454 = vmatpush.msrb.mxu3 %v3257_v46 }
 0x4f5   :  { %3534 = vmatpush.msra.mxu1 %v4859_v24  ;;  %3485 = vmatpush.msra.mxu0 %v3300_v19  ;;  %v3583_v19 = vld [vmem:[%s5073_s5] ss:$0 sm:$0xff] }
 0x4f6   :  { %3407 = vmatpush.msrb.mxu2 %v5001_v39 }
 0x4f7   :  { %3536 = vmatpush.msra.mxu1 %v4861_v33  ;;  %3489 = vmatpush.msra.mxu0 %v3306_v58 }
 0x4f8   :  { %3410 = vmatpush.msrb.mxu2 %v3347_v2 }
 0x4f9   :  { %3538 = vmatpush.msra.mxu1 %v4863_v57  ;;  %3493 = vmatpush.msra.mxu0 %v3312_v6 }
 0x4fa   :  { %3413 = vmatpush.msrb.mxu2 %v3353_v45 }
 0x4fb   :  { %3540 = vmatpush.msra.mxu1 %v4865_v14  ;;  %3497 = vmatpush.msra.mxu0 %v3318_v4 }
 0x4fc   :  { %3416 = vmatpush.msrb.mxu2 %v3359_v55 }
 0x4fd   :  { %3542 = vmatpush.msra.mxu1 %v4867_v15  ;;  %3501 = vmatpush.msra.mxu0 %v3324_v53 }
 0x4ff   :  { %3544 = vmatpush.msra.mxu1 %v4888_v17  ;;  %3505 = vmatpush.msra.mxu0 %v3330_v25 }
 0x501   :  { %3546 = vmatpush.msra.mxu1 %v4915_v23  ;;  %3509 = vmatpush.msra.mxu0 %v3336_v47 }
 0x503   :  { %3548 = vmatpush.msra.mxu1 %v4925_v8  ;;  %3513 = vmatpush.msra.mxu0 %v3342_v16 }
 0x505   :  { %3550 = vmatpush.msra.mxu1 %v4966_v1  ;;  %3517 = vmatpush.msra.mxu0 %v3348_v50 }
 0x507   :  { %3552 = vmatpush.msra.mxu1 %v4971_v36  ;;  %3521 = vmatpush.msra.mxu0 %v3354_v52 }
 0x509   :  { %3554 = vmatpush.msra.mxu1 %v4979_v43  ;;  %3525 = vmatpush.msra.mxu0 %v3360_v0 }
 0x50b   :  { %3556 = vmatpush.msra.mxu1 %v4991_v38 }
 0x50d   :  { %3558 = vmatpush.msra.mxu1 %v5005_v59 }
 0x50f   :  { %3560 = vmatpush.msra.mxu1 %v5012_v18 }
 0x511   :  { %3562 = vmatpush.msra.mxu1 %v3257_v46 }
 0x554   :  { %v3057_v57 = vpop.f32.mrf.mxu0 }
 0x556   :  { %v3096_v15 = vpop.f32.mrf.mxu1 }
 0x558   :  { %v3003_v12 = vpop.f32.mrf.mxu3 }
 0x560   :  { %v2902_v24 = vpop.f32.mrf.mxu2  ;;  %v3202_v3 = vpop.f32.mrf.mxu3 }
 0x561   :  { %v3004_v33 = vadd.f32 %v3003_v12, %v2902_v24 }
 0x563   :  { %v3058_v14 = vadd.f32 %v3057_v57, %v3004_v33 }
 0x565   :  { %v3097_v7 = vadd.f32 %v3096_v15, %v3058_v14 }
 0x568   :  { %v3165_v22 = vpop.f32.mrf.mxu2 }
 0x569   :  { %v3166_v40 = vadd.f32 %v3165_v22, %v3097_v7 }
 0x56b   :  { %v3203_v10 = vadd.f32 %v3202_v3, %v3166_v40 }
 0x56d   :  { %v3205_v17 = vadd.f32 %v3203_v10, %v5349_v13 }
 0x56f   :  { %3598 = vtanh.f32 %v3205_v17 }
 0x575   :  { %v3599_v41 = vpop.eup %3598 }
 0x576   :  { %v3259_v5 = vand.u32 4294901760, %v3599_v41 }
 0x578   :  { %3365 = vmatmul.f32.vlgmr.msrb.gmra.mxu1 %v3259_v5  ;;  %v3260_v11 = vsub.f32 %v3599_v41, %v3259_v5 }
 0x57a   :  { %3419 = vmatmul.f32.vlgmr.msrb.gmra.mxu2 %v3260_v11  ;;  %v3261_v26 = vand.u32 4294901760, %v3260_v11 }
 0x57c   :  { %v3262_v54 = vsub.f32 %v3260_v11, %v3261_v26  ;;  %3458 = vmatmul.f32.vlgmr.msrb.gmra.mxu3 %v3261_v26 }
 0x57e   :  { %v3263_v31 = vand.u32 4294901760, %v3262_v54 }
 0x580   :  { %3264 = vmatmul.f32.vlgmr.msrb.gmra.mxu0 %v3263_v31  ;;  %3564 = vmatmul.f32.vlgmr.msra.gmra.mxu1 %v3259_v5 }
 0x588   :  { %3527 = vmatmul.f32.vlgmr.msra.gmra.mxu0 %v3259_v5 }
 0x5f5   :  { %v3366_v23 = vpop.f32.mrf.mxu1 }
 0x5fd   :  { %v3265_v58 = vpop.f32.mrf.mxu0  ;;  %v3420_v6 = vpop.f32.mrf.mxu2 }
 0x5fe   :  { %v3266_v30 = vadd.f32 %v3583_v19, %v3265_v58  ;;  %v3565_v53 = vpop.f32.mrf.mxu1 }
 0x5ff   :  { %v3459_v4 = vpop.f32.mrf.mxu3 }
 0x600   :  { %v3367_v8 = vadd.f32 %v3366_v23, %v3266_v30 }
 0x602   :  { %v3421_v29 = vadd.f32 %v3420_v6, %v3367_v8 }
 0x604   :  { %v3460_v1 = vadd.f32 %v3459_v4, %v3421_v29 }
 0x605   :  { %v3528_v35 = vpop.f32.mrf.mxu0 }
 0x606   :  { %v3529_v36 = vadd.f32 %v3528_v35, %v3460_v1 }
 0x608   :  { %v3566_v21 = vadd.f32 %v3565_v53, %v3529_v36 }
 0x60a   :  { %3568 = vst [vmem:[%s5074_s6] sm:$0xff] %v3566_v21 }
 0x60b   :  { %3573 = vsyncpa [#allocation3], 1 }
 0x60c   :  { %3574 = vsyncpa [#allocation5], 1 }

</bundles_post_ra>
